<compile_context>
chip_gen: v6e
topology: v6e:2x2x1
jax: 0.10.0
libtpu: 0.0.40
codegen_flags: <defaults>
</compile_context>

<pallas_src>
import functools

import numpy as np

import jax
import jax.numpy as jnp
from jax.experimental import pallas as pl
from jax.experimental.pallas import tpu as pltpu


# ---------------------------------------------------------------------------
# Kernel 1: conv stack.  One grid step = Nb samples, activation kept
# channel-major as (cin, Nb*S) so every conv is a lane-dense MXU matmul.
# ---------------------------------------------------------------------------
def _conv_stack_kernel(*refs, n_conv, H, W):
    x_ref, tap_ref = refs[0], refs[1]
    conv_refs = [(refs[2 + 2 * i], refs[3 + 2 * i]) for i in range(n_conv)]
    o_ref = refs[2 + 2 * n_conv]

    a = x_ref[...].astype(jnp.float32)              # (C0, Lb), Lb = Nb*S
    tv = tap_ref[...]                               # (9, Lb) in {0, 1}
    Lb = a.shape[1]
    ext = W + 1                                     # covers shifts in [-W-1, W+1]

    for w_ref, b_ref in conv_refs:
        cin = a.shape[0]
        mm_dtype = w_ref.dtype
        zpad = jnp.zeros((cin, ext), jnp.float32)
        a_ext = jnp.concatenate([zpad, a, zpad], axis=1)      # (cin, Lb + 2*ext)
        # TODO(synk): the lane-extend + slice could become
        #   pltpu.roll(a, -off, axis=-1) * mask  (XLU path, no extra copy);
        # kept the proven slice form pending an interpret-mode roll-sign check.
        acc = None
        for kh in range(3):
            for kw in range(3):
                t = kh * 3 + kw
                off = (kh - 1) * W + (kw - 1)                 # flattened shift
                sl = a_ext[:, ext + off: ext + off + Lb]      # (cin, Lb)
                if not (kh == 1 and kw == 1):
                    # zero out-of-image taps (also kills cross-sample bleed)
                    sl = sl * tv[t:t + 1, :]
                p = jnp.dot(w_ref[t], sl.astype(mm_dtype),
                            preferred_element_type=jnp.float32)
                acc = p if acc is None else acc + p
        a = jnp.maximum(acc + b_ref[...], 0.0)                # bias + ReLU (f32)

    o_ref[...] = a.astype(o_ref.dtype)


# ---------------------------------------------------------------------------
# Kernel 2: fc stack.  One grid step = Nb samples, activation (Nb, Din);
# Linear -> Dropout -> ReLU per layer, output padded to 128 lanes.
# ---------------------------------------------------------------------------
def _fc_stack_kernel(*refs, n_fc, d_last, d_pad):
    x_ref = refs[0]
    fc_refs = [(refs[1 + 3 * i], refs[2 + 3 * i], refs[3 + 3 * i])
               for i in range(n_fc)]
    o_ref = refs[1 + 3 * n_fc]

    h = x_ref[...].astype(jnp.float32)                        # (Nb, Din)
    for w_ref, b_ref, m_ref in fc_refs:
        y = jnp.dot(h.astype(w_ref.dtype), w_ref[...],
                    preferred_element_type=jnp.float32)       # (Nb, Dout)
        h = jnp.maximum((y + b_ref[...]) * m_ref[...], 0.0)   # dropout + ReLU
    if d_pad > d_last:                                        # lane-dense store
        h = jnp.concatenate(
            [h, jnp.zeros((h.shape[0], d_pad - d_last), h.dtype)], axis=1)
    o_ref[...] = h.astype(o_ref.dtype)


# ---------------------------------------------------------------------------
# One-time parameter / constant preparation (kept off the forward path).
# ---------------------------------------------------------------------------
def _tap_validity(H, W):
    """(9, H*W) f32 masks that emulate zero padding for the 9 conv taps."""
    hh, ww = np.divmod(np.arange(H * W), W)
    rows = []
    for kh in range(3):
        for kw in range(3):
            dh, dw = kh - 1, kw - 1
            rows.append(((hh + dh >= 0) & (hh + dh < H) &
                         (ww + dw >= 0) & (ww + dw < W)).astype(np.float32))
    return jnp.asarray(np.stack(rows, axis=0))


def prepare_params(conv_params, fc_params, H, W, matmul_dtype=jnp.float32):
    """Re-layout PyTorch-layout parameters into kernel layout (done once).

    conv w (Cout,Cin,3,3) -> (9, Cout, Cin) per-tap matrices, bias -> (Cout,1);
    fc w (Dout,Din) -> (Din,Dout).  matmul_dtype=jnp.bfloat16 halves weight
    VMEM / DMA bytes at production scale (accumulation stays f32 in-kernel;
    elementwise math stays f32 which is also what v5e wants).
    """
    conv_kp = []
    for w, b in conv_params:
        cout, cin = w.shape[0], w.shape[1]
        w9 = jnp.transpose(w, (2, 3, 0, 1)).reshape(9, cout, cin)
        conv_kp.append((w9.astype(matmul_dtype),
                        b.reshape(cout, 1).astype(jnp.float32)))
    fc_kp = []
    for w, b in fc_params:
        fc_kp.append((jnp.transpose(w).astype(matmul_dtype),
                      b.reshape(1, -1).astype(jnp.float32)))
    return conv_kp, fc_kp, _tap_validity(H, W)


def make_dropout_masks(key, rate, batch, fc_dims, training=True):
    """Inverted-dropout scale factors, one (batch, dim) array per FC layer.

    TODO(synk): torch's dropout RNG stream cannot be reproduced; masks are
    drawn with jax.random (Bernoulli(1-p), kept values scaled by 1/(1-p)).
    """
    masks = []
    for j, d in enumerate(fc_dims):
        if training and rate > 0.0:
            keep = jax.random.bernoulli(jax.random.fold_in(key, j),
                                        p=1.0 - rate, shape=(batch, d))
            masks.append(keep.astype(jnp.float32) * (1.0 / (1.0 - rate)))
        else:
            masks.append(jnp.ones((batch, d), jnp.float32))
    return masks


# ---------------------------------------------------------------------------
# Forward wrapper: two batch-parallel pallas_calls (conv stack, fc stack).
# ---------------------------------------------------------------------------
def dropout_fastrcnn_convfc_head(x_nchw, conv_kp, fc_kp, tap_valid,
                                 dropout_masks, *, block_n=8):
    N, C, H, W = x_nchw.shape
    S = H * W
    n_conv, n_fc = len(conv_kp), len(fc_kp)
    cp = pltpu.CompilerParams(dimension_semantics=("parallel",),
                              vmem_limit_bytes=64 * 1024 * 1024)

    # ---- batch blocking: Nb samples per grid step ---------------------------
    if N <= block_n:
        nb, npad = N, N
    else:
        nb = block_n
        assert nb % 8 == 0, "block_n must be a multiple of 8 when N > block_n"
        npad = pl.cdiv(N, nb) * nb
    pad = npad - N

    # ---- conv stack ----------------------------------------------------------
    if n_conv:
        xc = x_nchw.reshape(N, C, S)
        if pad:
            xc = jnp.concatenate([xc, jnp.zeros((pad, C, S), xc.dtype)], axis=0)
        xc = jnp.transpose(xc, (1, 0, 2)).reshape(C, npad * S)   # channel-major
        tap_tiled = jnp.tile(tap_valid, (1, nb))                 # (9, nb*S)

        inputs = [xc, tap_tiled]
        # NOTE: constant-index weight/bias/tap blocks could additionally use
        # pipeline_mode=pl.Buffered(1) to drop their second VMEM buffer; only
        # relevant at production channel counts on v7x's 64 MiB VMEM.
        in_specs = [pl.BlockSpec((C, nb * S), lambda g: (0, g)),
                    pl.BlockSpec((9, nb * S), lambda g: (0, 0))]
        for w9, bcol in conv_kp:
            inputs += [w9, bcol]
            in_specs += [pl.BlockSpec(w9.shape, lambda g: (0, 0, 0)),
                         pl.BlockSpec(bcol.shape, lambda g: (0, 0))]
        c_last = conv_kp[-1][0].shape[1]

        conv_out = pl.pallas_call(
            functools.partial(_conv_stack_kernel, n_conv=n_conv, H=H, W=W),
            out_shape=jax.ShapeDtypeStruct((c_last, npad * S), jnp.float32),
            grid=(npad // nb,),
            in_specs=in_specs,
            out_specs=pl.BlockSpec((c_last, nb * S), lambda g: (0, g)),
            compiler_params=cp,
        )(*inputs)

        # torch.flatten(x, 1) order, produced at the XLA level (cheap).
        act = jnp.transpose(conv_out.reshape(c_last, npad, S), (1, 0, 2))
        if not n_fc:
            return act[:N].reshape(N, c_last, H, W)
        flat = act.reshape(npad, c_last * S)
    else:
        flat = x_nchw.reshape(N, C * S)
        if pad:
            flat = jnp.concatenate(
                [flat, jnp.zeros((pad, flat.shape[1]), flat.dtype)], axis=0)

    # ---- fc stack ------------------------------------------------------------
    din = flat.shape[1]
    d_last = fc_kp[-1][0].shape[1]
    d_pad = pl.cdiv(d_last, 128) * 128            # lane-dense output block
    inputs = [flat]
    in_specs = [pl.BlockSpec((nb, din), lambda g: (g, 0))]
    # TODO(synk): at production FastRCNN scale (Din=12544, D0=1024, N~1e3) the
    # first FC weight must be K-tiled over an extra "arbitrary" grid axis with
    # a VMEM accumulator (and bf16 weights) instead of one resident block;
    # mandatory on v7x (64 MiB VMEM), advisable on v5e/v6e.
    for (wk, brow), m in zip(fc_kp, dropout_masks):
        if pad:
            m = jnp.concatenate([m, jnp.ones((pad, m.shape[1]), m.dtype)],
                                axis=0)
        inputs += [wk, brow, m]
        in_specs += [pl.BlockSpec(wk.shape, lambda g: (0, 0)),
                     pl.BlockSpec(brow.shape, lambda g: (0, 0)),
                     pl.BlockSpec((nb, m.shape[1]), lambda g: (g, 0))]

    out = pl.pallas_call(
        functools.partial(_fc_stack_kernel, n_fc=n_fc,
                          d_last=d_last, d_pad=d_pad),
        out_shape=jax.ShapeDtypeStruct((npad, d_pad), x_nchw.dtype),
        grid=(npad // nb,),
        in_specs=in_specs,
        out_specs=pl.BlockSpec((nb, d_pad), lambda g: (g, 0)),
        compiler_params=cp,
    )(*inputs)
    return out[:N, :d_last]


# ---------------------------------------------------------------------------
# Pure-JAX reference of the PyTorch forward (for the correctness assert).
# ---------------------------------------------------------------------------
def reference_forward(x, conv_params, fc_params, dropout_masks):
    a = x
    for w, b in conv_params:
        a = jax.lax.conv_general_dilated(
            a, w, window_strides=(1, 1), padding=((1, 1), (1, 1)),
            dimension_numbers=("NCHW", "OIHW", "NCHW"))
        a = jnp.maximum(a + b.reshape(1, -1, 1, 1), 0.0)
    if fc_params:
        a = a.reshape(a.shape[0], -1)                  # torch.flatten(x, 1)
        for (w, b), m in zip(fc_params, dropout_masks):
            a = jnp.maximum((a @ w.T + b) * m, 0.0)    # relu(dropout(linear))
    return a


if __name__ == "__main__":
    # Config consistent with the module: input (channels=4, 16x16),
    # conv_dims=[8, 8], fc_dims=[32, 32], conv_norm='' (bias), dropout=0.25.
    N, C, H, W = 2, 4, 16, 16
    conv_dims = [8, 8]
    fc_dims = [32, 32]
    dropout_rate = 0.25

    key = jax.random.PRNGKey(0)
    keys = jax.random.split(key, 2 * (len(conv_dims) + len(fc_dims)) + 2)
    kit = iter(range(len(keys)))

    x = jax.random.normal(keys[next(kit)], (N, C, H, W), jnp.float32)

    conv_params, cin = [], C
    for cd in conv_dims:
        fan_in = cin * 9
        w = jax.random.normal(keys[next(kit)], (cd, cin, 3, 3),
                              jnp.float32) * (2.0 / fan_in) ** 0.5
        b = jax.random.normal(keys[next(kit)], (cd,), jnp.float32) * 0.05
        conv_params.append((w, b))
        cin = cd

    fc_params, fin = [], cin * H * W
    for fd in fc_dims:
        w = jax.random.normal(keys[next(kit)], (fd, fin),
                              jnp.float32) * (1.0 / fin) ** 0.5
        b = jax.random.normal(keys[next(kit)], (fd,), jnp.float32) * 0.05
        fc_params.append((w, b))
        fin = fd

    masks = make_dropout_masks(keys[next(kit)], dropout_rate, N, fc_dims,
                               training=True)

    # One-time re-layout (use matmul_dtype=jnp.bfloat16 in production; the
    # demo stays f32 to match the torch module's numerics exactly).
    conv_kp, fc_kp, tap_valid = prepare_params(conv_params, fc_params, H, W)

    fwd = jax.jit(functools.partial(dropout_fastrcnn_convfc_head, block_n=8))
    out = jax.block_until_ready(fwd(x, conv_kp, fc_kp, tap_valid, masks))

    ref = reference_forward(x, conv_params, fc_params, masks)
    assert out.shape == (N, fc_dims[-1]), out.shape
    err = float(jnp.max(jnp.abs(out - ref)))
    assert jnp.allclose(out, ref, rtol=1e-2, atol=1e-2), f"mismatch, max err {err}"
    print("KERNEL_OK")
</pallas_src>

<mosaic_0001>
module attributes {stable_mosaic.version = 11 : i64} {
  func.func @_conv_stack_kernel(%arg0: i32, %arg1: memref<4x512xf32, #tpu.memory_space<vmem>>, %arg2: memref<9x512xf32, #tpu.memory_space<vmem>>, %arg3: memref<9x8x4xf32, #tpu.memory_space<vmem>>, %arg4: memref<8x1xf32, #tpu.memory_space<vmem>>, %arg5: memref<9x8x8xf32, #tpu.memory_space<vmem>>, %arg6: memref<8x1xf32, #tpu.memory_space<vmem>>, %arg7: memref<8x512xf32, #tpu.memory_space<vmem>>) attributes {dimension_semantics = [#tpu.dimension_semantics<parallel>], iteration_bounds = array<i64: 1>, scalar_prefetch = 0 : i64, scratch_operands = 0 : i64, tpu.core_type = #tpu.core_type<tc>, window_params = [{transform_indices = @transform_0, window_bounds = array<i64: 4, 512>}, {pipeline_mode = #tpu.pipeline_mode<synchronous>, transform_indices = @transform_1, window_bounds = array<i64: 9, 512>}, {pipeline_mode = #tpu.pipeline_mode<synchronous>, transform_indices = @transform_2, window_bounds = array<i64: 9, 8, 4>}, {pipeline_mode = #tpu.pipeline_mode<synchronous>, transform_indices = @transform_3, window_bounds = array<i64: 8, 1>}, {pipeline_mode = #tpu.pipeline_mode<synchronous>, transform_indices = @transform_4, window_bounds = array<i64: 9, 8, 8>}, {pipeline_mode = #tpu.pipeline_mode<synchronous>, transform_indices = @transform_5, window_bounds = array<i64: 8, 1>}, {transform_indices = @transform_6, window_bounds = array<i64: 8, 512>}]} {
    %c0 = arith.constant 0 : index
    %c0_0 = arith.constant 0 : index
    %0 = vector.load %arg1[%c0, %c0_0] : memref<4x512xf32, #tpu.memory_space<vmem>>, vector<4x512xf32>
    %c0_1 = arith.constant 0 : index
    %c0_2 = arith.constant 0 : index
    %1 = vector.load %arg2[%c0_1, %c0_2] : memref<9x512xf32, #tpu.memory_space<vmem>>, vector<9x512xf32>
    %cst = arith.constant 0.000000e+00 : f32
    %2 = vector.broadcast %cst : f32 to vector<4x17xf32>
    %3 = tpu.concatenate %2, %0, %2 in 1 : vector<4x17xf32>, vector<4x512xf32>, vector<4x17xf32> -> vector<4x546xf32>
    %4 = vector.extract_strided_slice %3 {offsets = [0, 0], sizes = [4, 512], strides = [1, 1]} : vector<4x546xf32> to vector<4x512xf32>
    %5 = vector.extract_strided_slice %1 {offsets = [0, 0], sizes = [1, 512], strides = [1, 1]} : vector<9x512xf32> to vector<1x512xf32>
    %6 = vector.broadcast %5 : vector<1x512xf32> to vector<4x512xf32>
    %7 = arith.mulf %4, %6 : vector<4x512xf32>
    %c0_3 = arith.constant 0 : index
    %c0_4 = arith.constant 0 : index
    %c0_5 = arith.constant 0 : index
    %8 = vector.load %arg3[%c0_3, %c0_4, %c0_5] : memref<9x8x4xf32, #tpu.memory_space<vmem>>, vector<1x8x4xf32>
    %9 = vector.shape_cast %8 : vector<1x8x4xf32> to vector<8x4xf32>
    %cst_6 = arith.constant dense<0.000000e+00> : vector<8x512xf32>
    %10 = tpu.matmul %9, %7, %cst_6 {dimension_numbers = #tpu.dot_dimension_numbers<[1], [0], [0], [1], [0, 0, 1, 1], [], []>} : vector<8x4xf32>, vector<4x512xf32>, vector<8x512xf32> -> vector<8x512xf32>
    %11 = vector.extract_strided_slice %3 {offsets = [0, 1], sizes = [4, 512], strides = [1, 1]} : vector<4x546xf32> to vector<4x512xf32>
    %12 = vector.extract_strided_slice %1 {offsets = [1, 0], sizes = [1, 512], strides = [1, 1]} : vector<9x512xf32> to vector<1x512xf32>
    %13 = vector.broadcast %12 : vector<1x512xf32> to vector<4x512xf32>
    %14 = arith.mulf %11, %13 : vector<4x512xf32>
    %c1 = arith.constant 1 : index
    %c0_7 = arith.constant 0 : index
    %c0_8 = arith.constant 0 : index
    %15 = vector.load %arg3[%c1, %c0_7, %c0_8] : memref<9x8x4xf32, #tpu.memory_space<vmem>>, vector<1x8x4xf32>
    %16 = vector.shape_cast %15 : vector<1x8x4xf32> to vector<8x4xf32>
    %cst_9 = arith.constant dense<0.000000e+00> : vector<8x512xf32>
    %17 = tpu.matmul %16, %14, %cst_9 {dimension_numbers = #tpu.dot_dimension_numbers<[1], [0], [0], [1], [0, 0, 1, 1], [], []>} : vector<8x4xf32>, vector<4x512xf32>, vector<8x512xf32> -> vector<8x512xf32>
    %18 = arith.addf %10, %17 : vector<8x512xf32>
    %19 = vector.extract_strided_slice %3 {offsets = [0, 2], sizes = [4, 512], strides = [1, 1]} : vector<4x546xf32> to vector<4x512xf32>
    %20 = vector.extract_strided_slice %1 {offsets = [2, 0], sizes = [1, 512], strides = [1, 1]} : vector<9x512xf32> to vector<1x512xf32>
    %21 = vector.broadcast %20 : vector<1x512xf32> to vector<4x512xf32>
    %22 = arith.mulf %19, %21 : vector<4x512xf32>
    %c2 = arith.constant 2 : index
    %c0_10 = arith.constant 0 : index
    %c0_11 = arith.constant 0 : index
    %23 = vector.load %arg3[%c2, %c0_10, %c0_11] : memref<9x8x4xf32, #tpu.memory_space<vmem>>, vector<1x8x4xf32>
    %24 = vector.shape_cast %23 : vector<1x8x4xf32> to vector<8x4xf32>
    %cst_12 = arith.constant dense<0.000000e+00> : vector<8x512xf32>
    %25 = tpu.matmul %24, %22, %cst_12 {dimension_numbers = #tpu.dot_dimension_numbers<[1], [0], [0], [1], [0, 0, 1, 1], [], []>} : vector<8x4xf32>, vector<4x512xf32>, vector<8x512xf32> -> vector<8x512xf32>
    %26 = arith.addf %18, %25 : vector<8x512xf32>
    %27 = vector.extract_strided_slice %3 {offsets = [0, 16], sizes = [4, 512], strides = [1, 1]} : vector<4x546xf32> to vector<4x512xf32>
    %28 = vector.extract_strided_slice %1 {offsets = [3, 0], sizes = [1, 512], strides = [1, 1]} : vector<9x512xf32> to vector<1x512xf32>
    %29 = vector.broadcast %28 : vector<1x512xf32> to vector<4x512xf32>
    %30 = arith.mulf %27, %29 : vector<4x512xf32>
    %c3 = arith.constant 3 : index
    %c0_13 = arith.constant 0 : index
    %c0_14 = arith.constant 0 : index
    %31 = vector.load %arg3[%c3, %c0_13, %c0_14] : memref<9x8x4xf32, #tpu.memory_space<vmem>>, vector<1x8x4xf32>
    %32 = vector.shape_cast %31 : vector<1x8x4xf32> to vector<8x4xf32>
    %cst_15 = arith.constant dense<0.000000e+00> : vector<8x512xf32>
    %33 = tpu.matmul %32, %30, %cst_15 {dimension_numbers = #tpu.dot_dimension_numbers<[1], [0], [0], [1], [0, 0, 1, 1], [], []>} : vector<8x4xf32>, vector<4x512xf32>, vector<8x512xf32> -> vector<8x512xf32>
    %34 = arith.addf %26, %33 : vector<8x512xf32>
    %35 = vector.extract_strided_slice %3 {offsets = [0, 17], sizes = [4, 512], strides = [1, 1]} : vector<4x546xf32> to vector<4x512xf32>
    %c4 = arith.constant 4 : index
    %c0_16 = arith.constant 0 : index
    %c0_17 = arith.constant 0 : index
    %36 = vector.load %arg3[%c4, %c0_16, %c0_17] : memref<9x8x4xf32, #tpu.memory_space<vmem>>, vector<1x8x4xf32>
    %37 = vector.shape_cast %36 : vector<1x8x4xf32> to vector<8x4xf32>
    %cst_18 = arith.constant dense<0.000000e+00> : vector<8x512xf32>
    %38 = tpu.matmul %37, %35, %cst_18 {dimension_numbers = #tpu.dot_dimension_numbers<[1], [0], [0], [1], [0, 0, 1, 1], [], []>} : vector<8x4xf32>, vector<4x512xf32>, vector<8x512xf32> -> vector<8x512xf32>
    %39 = arith.addf %34, %38 : vector<8x512xf32>
    %40 = vector.extract_strided_slice %3 {offsets = [0, 18], sizes = [4, 512], strides = [1, 1]} : vector<4x546xf32> to vector<4x512xf32>
    %41 = vector.extract_strided_slice %1 {offsets = [5, 0], sizes = [1, 512], strides = [1, 1]} : vector<9x512xf32> to vector<1x512xf32>
    %42 = vector.broadcast %41 : vector<1x512xf32> to vector<4x512xf32>
    %43 = arith.mulf %40, %42 : vector<4x512xf32>
    %c5 = arith.constant 5 : index
    %c0_19 = arith.constant 0 : index
    %c0_20 = arith.constant 0 : index
    %44 = vector.load %arg3[%c5, %c0_19, %c0_20] : memref<9x8x4xf32, #tpu.memory_space<vmem>>, vector<1x8x4xf32>
    %45 = vector.shape_cast %44 : vector<1x8x4xf32> to vector<8x4xf32>
    %cst_21 = arith.constant dense<0.000000e+00> : vector<8x512xf32>
    %46 = tpu.matmul %45, %43, %cst_21 {dimension_numbers = #tpu.dot_dimension_numbers<[1], [0], [0], [1], [0, 0, 1, 1], [], []>} : vector<8x4xf32>, vector<4x512xf32>, vector<8x512xf32> -> vector<8x512xf32>
    %47 = arith.addf %39, %46 : vector<8x512xf32>
    %48 = vector.extract_strided_slice %3 {offsets = [0, 32], sizes = [4, 512], strides = [1, 1]} : vector<4x546xf32> to vector<4x512xf32>
    %49 = vector.extract_strided_slice %1 {offsets = [6, 0], sizes = [1, 512], strides = [1, 1]} : vector<9x512xf32> to vector<1x512xf32>
    %50 = vector.broadcast %49 : vector<1x512xf32> to vector<4x512xf32>
    %51 = arith.mulf %48, %50 : vector<4x512xf32>
    %c6 = arith.constant 6 : index
    %c0_22 = arith.constant 0 : index
    %c0_23 = arith.constant 0 : index
    %52 = vector.load %arg3[%c6, %c0_22, %c0_23] : memref<9x8x4xf32, #tpu.memory_space<vmem>>, vector<1x8x4xf32>
    %53 = vector.shape_cast %52 : vector<1x8x4xf32> to vector<8x4xf32>
    %cst_24 = arith.constant dense<0.000000e+00> : vector<8x512xf32>
    %54 = tpu.matmul %53, %51, %cst_24 {dimension_numbers = #tpu.dot_dimension_numbers<[1], [0], [0], [1], [0, 0, 1, 1], [], []>} : vector<8x4xf32>, vector<4x512xf32>, vector<8x512xf32> -> vector<8x512xf32>
    %55 = arith.addf %47, %54 : vector<8x512xf32>
    %56 = vector.extract_strided_slice %3 {offsets = [0, 33], sizes = [4, 512], strides = [1, 1]} : vector<4x546xf32> to vector<4x512xf32>
    %57 = vector.extract_strided_slice %1 {offsets = [7, 0], sizes = [1, 512], strides = [1, 1]} : vector<9x512xf32> to vector<1x512xf32>
    %58 = vector.broadcast %57 : vector<1x512xf32> to vector<4x512xf32>
    %59 = arith.mulf %56, %58 : vector<4x512xf32>
    %c7 = arith.constant 7 : index
    %c0_25 = arith.constant 0 : index
    %c0_26 = arith.constant 0 : index
    %60 = vector.load %arg3[%c7, %c0_25, %c0_26] : memref<9x8x4xf32, #tpu.memory_space<vmem>>, vector<1x8x4xf32>
    %61 = vector.shape_cast %60 : vector<1x8x4xf32> to vector<8x4xf32>
    %cst_27 = arith.constant dense<0.000000e+00> : vector<8x512xf32>
    %62 = tpu.matmul %61, %59, %cst_27 {dimension_numbers = #tpu.dot_dimension_numbers<[1], [0], [0], [1], [0, 0, 1, 1], [], []>} : vector<8x4xf32>, vector<4x512xf32>, vector<8x512xf32> -> vector<8x512xf32>
    %63 = arith.addf %55, %62 : vector<8x512xf32>
    %64 = vector.extract_strided_slice %3 {offsets = [0, 34], sizes = [4, 512], strides = [1, 1]} : vector<4x546xf32> to vector<4x512xf32>
    %65 = vector.extract_strided_slice %1 {offsets = [8, 0], sizes = [1, 512], strides = [1, 1]} : vector<9x512xf32> to vector<1x512xf32>
    %66 = vector.broadcast %65 : vector<1x512xf32> to vector<4x512xf32>
    %67 = arith.mulf %64, %66 : vector<4x512xf32>
    %c8 = arith.constant 8 : index
    %c0_28 = arith.constant 0 : index
    %c0_29 = arith.constant 0 : index
    %68 = vector.load %arg3[%c8, %c0_28, %c0_29] : memref<9x8x4xf32, #tpu.memory_space<vmem>>, vector<1x8x4xf32>
    %69 = vector.shape_cast %68 : vector<1x8x4xf32> to vector<8x4xf32>
    %cst_30 = arith.constant dense<0.000000e+00> : vector<8x512xf32>
    %70 = tpu.matmul %69, %67, %cst_30 {dimension_numbers = #tpu.dot_dimension_numbers<[1], [0], [0], [1], [0, 0, 1, 1], [], []>} : vector<8x4xf32>, vector<4x512xf32>, vector<8x512xf32> -> vector<8x512xf32>
    %71 = arith.addf %63, %70 : vector<8x512xf32>
    %c0_31 = arith.constant 0 : index
    %c0_32 = arith.constant 0 : index
    %72 = vector.load %arg4[%c0_31, %c0_32] : memref<8x1xf32, #tpu.memory_space<vmem>>, vector<8x1xf32>
    %73 = vector.broadcast %72 : vector<8x1xf32> to vector<8x512xf32>
    %74 = arith.addf %71, %73 : vector<8x512xf32>
    %cst_33 = arith.constant 0.000000e+00 : f32
    %75 = vector.broadcast %cst_33 : f32 to vector<8x512xf32>
    %76 = arith.maximumf %74, %75 : vector<8x512xf32>
    %cst_34 = arith.constant 0.000000e+00 : f32
    %77 = vector.broadcast %cst_34 : f32 to vector<8x17xf32>
    %78 = tpu.concatenate %77, %76, %77 in 1 : vector<8x17xf32>, vector<8x512xf32>, vector<8x17xf32> -> vector<8x546xf32>
    %79 = vector.extract_strided_slice %78 {offsets = [0, 0], sizes = [8, 512], strides = [1, 1]} : vector<8x546xf32> to vector<8x512xf32>
    %80 = vector.extract_strided_slice %1 {offsets = [0, 0], sizes = [1, 512], strides = [1, 1]} : vector<9x512xf32> to vector<1x512xf32>
    %81 = vector.broadcast %80 : vector<1x512xf32> to vector<8x512xf32>
    %82 = arith.mulf %79, %81 : vector<8x512xf32>
    %c0_35 = arith.constant 0 : index
    %c0_36 = arith.constant 0 : index
    %c0_37 = arith.constant 0 : index
    %83 = vector.load %arg5[%c0_35, %c0_36, %c0_37] : memref<9x8x8xf32, #tpu.memory_space<vmem>>, vector<1x8x8xf32>
    %84 = vector.shape_cast %83 : vector<1x8x8xf32> to vector<8x8xf32>
    %cst_38 = arith.constant dense<0.000000e+00> : vector<8x512xf32>
    %85 = tpu.matmul %84, %82, %cst_38 {dimension_numbers = #tpu.dot_dimension_numbers<[1], [0], [0], [1], [0, 0, 1, 1], [], []>} : vector<8x8xf32>, vector<8x512xf32>, vector<8x512xf32> -> vector<8x512xf32>
    %86 = vector.extract_strided_slice %78 {offsets = [0, 1], sizes = [8, 512], strides = [1, 1]} : vector<8x546xf32> to vector<8x512xf32>
    %87 = vector.extract_strided_slice %1 {offsets = [1, 0], sizes = [1, 512], strides = [1, 1]} : vector<9x512xf32> to vector<1x512xf32>
    %88 = vector.broadcast %87 : vector<1x512xf32> to vector<8x512xf32>
    %89 = arith.mulf %86, %88 : vector<8x512xf32>
    %c1_39 = arith.constant 1 : index
    %c0_40 = arith.constant 0 : index
    %c0_41 = arith.constant 0 : index
    %90 = vector.load %arg5[%c1_39, %c0_40, %c0_41] : memref<9x8x8xf32, #tpu.memory_space<vmem>>, vector<1x8x8xf32>
    %91 = vector.shape_cast %90 : vector<1x8x8xf32> to vector<8x8xf32>
    %cst_42 = arith.constant dense<0.000000e+00> : vector<8x512xf32>
    %92 = tpu.matmul %91, %89, %cst_42 {dimension_numbers = #tpu.dot_dimension_numbers<[1], [0], [0], [1], [0, 0, 1, 1], [], []>} : vector<8x8xf32>, vector<8x512xf32>, vector<8x512xf32> -> vector<8x512xf32>
    %93 = arith.addf %85, %92 : vector<8x512xf32>
    %94 = vector.extract_strided_slice %78 {offsets = [0, 2], sizes = [8, 512], strides = [1, 1]} : vector<8x546xf32> to vector<8x512xf32>
    %95 = vector.extract_strided_slice %1 {offsets = [2, 0], sizes = [1, 512], strides = [1, 1]} : vector<9x512xf32> to vector<1x512xf32>
    %96 = vector.broadcast %95 : vector<1x512xf32> to vector<8x512xf32>
    %97 = arith.mulf %94, %96 : vector<8x512xf32>
    %c2_43 = arith.constant 2 : index
    %c0_44 = arith.constant 0 : index
    %c0_45 = arith.constant 0 : index
    %98 = vector.load %arg5[%c2_43, %c0_44, %c0_45] : memref<9x8x8xf32, #tpu.memory_space<vmem>>, vector<1x8x8xf32>
    %99 = vector.shape_cast %98 : vector<1x8x8xf32> to vector<8x8xf32>
    %cst_46 = arith.constant dense<0.000000e+00> : vector<8x512xf32>
    %100 = tpu.matmul %99, %97, %cst_46 {dimension_numbers = #tpu.dot_dimension_numbers<[1], [0], [0], [1], [0, 0, 1, 1], [], []>} : vector<8x8xf32>, vector<8x512xf32>, vector<8x512xf32> -> vector<8x512xf32>
    %101 = arith.addf %93, %100 : vector<8x512xf32>
    %102 = vector.extract_strided_slice %78 {offsets = [0, 16], sizes = [8, 512], strides = [1, 1]} : vector<8x546xf32> to vector<8x512xf32>
    %103 = vector.extract_strided_slice %1 {offsets = [3, 0], sizes = [1, 512], strides = [1, 1]} : vector<9x512xf32> to vector<1x512xf32>
    %104 = vector.broadcast %103 : vector<1x512xf32> to vector<8x512xf32>
    %105 = arith.mulf %102, %104 : vector<8x512xf32>
    %c3_47 = arith.constant 3 : index
    %c0_48 = arith.constant 0 : index
    %c0_49 = arith.constant 0 : index
    %106 = vector.load %arg5[%c3_47, %c0_48, %c0_49] : memref<9x8x8xf32, #tpu.memory_space<vmem>>, vector<1x8x8xf32>
    %107 = vector.shape_cast %106 : vector<1x8x8xf32> to vector<8x8xf32>
    %cst_50 = arith.constant dense<0.000000e+00> : vector<8x512xf32>
    %108 = tpu.matmul %107, %105, %cst_50 {dimension_numbers = #tpu.dot_dimension_numbers<[1], [0], [0], [1], [0, 0, 1, 1], [], []>} : vector<8x8xf32>, vector<8x512xf32>, vector<8x512xf32> -> vector<8x512xf32>
    %109 = arith.addf %101, %108 : vector<8x512xf32>
    %110 = vector.extract_strided_slice %78 {offsets = [0, 17], sizes = [8, 512], strides = [1, 1]} : vector<8x546xf32> to vector<8x512xf32>
    %c4_51 = arith.constant 4 : index
    %c0_52 = arith.constant 0 : index
    %c0_53 = arith.constant 0 : index
    %111 = vector.load %arg5[%c4_51, %c0_52, %c0_53] : memref<9x8x8xf32, #tpu.memory_space<vmem>>, vector<1x8x8xf32>
    %112 = vector.shape_cast %111 : vector<1x8x8xf32> to vector<8x8xf32>
    %cst_54 = arith.constant dense<0.000000e+00> : vector<8x512xf32>
    %113 = tpu.matmul %112, %110, %cst_54 {dimension_numbers = #tpu.dot_dimension_numbers<[1], [0], [0], [1], [0, 0, 1, 1], [], []>} : vector<8x8xf32>, vector<8x512xf32>, vector<8x512xf32> -> vector<8x512xf32>
    %114 = arith.addf %109, %113 : vector<8x512xf32>
    %115 = vector.extract_strided_slice %78 {offsets = [0, 18], sizes = [8, 512], strides = [1, 1]} : vector<8x546xf32> to vector<8x512xf32>
    %116 = vector.extract_strided_slice %1 {offsets = [5, 0], sizes = [1, 512], strides = [1, 1]} : vector<9x512xf32> to vector<1x512xf32>
    %117 = vector.broadcast %116 : vector<1x512xf32> to vector<8x512xf32>
    %118 = arith.mulf %115, %117 : vector<8x512xf32>
    %c5_55 = arith.constant 5 : index
    %c0_56 = arith.constant 0 : index
    %c0_57 = arith.constant 0 : index
    %119 = vector.load %arg5[%c5_55, %c0_56, %c0_57] : memref<9x8x8xf32, #tpu.memory_space<vmem>>, vector<1x8x8xf32>
    %120 = vector.shape_cast %119 : vector<1x8x8xf32> to vector<8x8xf32>
    %cst_58 = arith.constant dense<0.000000e+00> : vector<8x512xf32>
    %121 = tpu.matmul %120, %118, %cst_58 {dimension_numbers = #tpu.dot_dimension_numbers<[1], [0], [0], [1], [0, 0, 1, 1], [], []>} : vector<8x8xf32>, vector<8x512xf32>, vector<8x512xf32> -> vector<8x512xf32>
    %122 = arith.addf %114, %121 : vector<8x512xf32>
    %123 = vector.extract_strided_slice %78 {offsets = [0, 32], sizes = [8, 512], strides = [1, 1]} : vector<8x546xf32> to vector<8x512xf32>
    %124 = vector.extract_strided_slice %1 {offsets = [6, 0], sizes = [1, 512], strides = [1, 1]} : vector<9x512xf32> to vector<1x512xf32>
    %125 = vector.broadcast %124 : vector<1x512xf32> to vector<8x512xf32>
    %126 = arith.mulf %123, %125 : vector<8x512xf32>
    %c6_59 = arith.constant 6 : index
    %c0_60 = arith.constant 0 : index
    %c0_61 = arith.constant 0 : index
    %127 = vector.load %arg5[%c6_59, %c0_60, %c0_61] : memref<9x8x8xf32, #tpu.memory_space<vmem>>, vector<1x8x8xf32>
    %128 = vector.shape_cast %127 : vector<1x8x8xf32> to vector<8x8xf32>
    %cst_62 = arith.constant dense<0.000000e+00> : vector<8x512xf32>
    %129 = tpu.matmul %128, %126, %cst_62 {dimension_numbers = #tpu.dot_dimension_numbers<[1], [0], [0], [1], [0, 0, 1, 1], [], []>} : vector<8x8xf32>, vector<8x512xf32>, vector<8x512xf32> -> vector<8x512xf32>
    %130 = arith.addf %122, %129 : vector<8x512xf32>
    %131 = vector.extract_strided_slice %78 {offsets = [0, 33], sizes = [8, 512], strides = [1, 1]} : vector<8x546xf32> to vector<8x512xf32>
    %132 = vector.extract_strided_slice %1 {offsets = [7, 0], sizes = [1, 512], strides = [1, 1]} : vector<9x512xf32> to vector<1x512xf32>
    %133 = vector.broadcast %132 : vector<1x512xf32> to vector<8x512xf32>
    %134 = arith.mulf %131, %133 : vector<8x512xf32>
    %c7_63 = arith.constant 7 : index
    %c0_64 = arith.constant 0 : index
    %c0_65 = arith.constant 0 : index
    %135 = vector.load %arg5[%c7_63, %c0_64, %c0_65] : memref<9x8x8xf32, #tpu.memory_space<vmem>>, vector<1x8x8xf32>
    %136 = vector.shape_cast %135 : vector<1x8x8xf32> to vector<8x8xf32>
    %cst_66 = arith.constant dense<0.000000e+00> : vector<8x512xf32>
    %137 = tpu.matmul %136, %134, %cst_66 {dimension_numbers = #tpu.dot_dimension_numbers<[1], [0], [0], [1], [0, 0, 1, 1], [], []>} : vector<8x8xf32>, vector<8x512xf32>, vector<8x512xf32> -> vector<8x512xf32>
    %138 = arith.addf %130, %137 : vector<8x512xf32>
    %139 = vector.extract_strided_slice %78 {offsets = [0, 34], sizes = [8, 512], strides = [1, 1]} : vector<8x546xf32> to vector<8x512xf32>
    %140 = vector.extract_strided_slice %1 {offsets = [8, 0], sizes = [1, 512], strides = [1, 1]} : vector<9x512xf32> to vector<1x512xf32>
    %141 = vector.broadcast %140 : vector<1x512xf32> to vector<8x512xf32>
    %142 = arith.mulf %139, %141 : vector<8x512xf32>
    %c8_67 = arith.constant 8 : index
    %c0_68 = arith.constant 0 : index
    %c0_69 = arith.constant 0 : index
    %143 = vector.load %arg5[%c8_67, %c0_68, %c0_69] : memref<9x8x8xf32, #tpu.memory_space<vmem>>, vector<1x8x8xf32>
    %144 = vector.shape_cast %143 : vector<1x8x8xf32> to vector<8x8xf32>
    %cst_70 = arith.constant dense<0.000000e+00> : vector<8x512xf32>
    %145 = tpu.matmul %144, %142, %cst_70 {dimension_numbers = #tpu.dot_dimension_numbers<[1], [0], [0], [1], [0, 0, 1, 1], [], []>} : vector<8x8xf32>, vector<8x512xf32>, vector<8x512xf32> -> vector<8x512xf32>
    %146 = arith.addf %138, %145 : vector<8x512xf32>
    %c0_71 = arith.constant 0 : index
    %c0_72 = arith.constant 0 : index
    %147 = vector.load %arg6[%c0_71, %c0_72] : memref<8x1xf32, #tpu.memory_space<vmem>>, vector<8x1xf32>
    %148 = vector.broadcast %147 : vector<8x1xf32> to vector<8x512xf32>
    %149 = arith.addf %146, %148 : vector<8x512xf32>
    %cst_73 = arith.constant 0.000000e+00 : f32
    %150 = vector.broadcast %cst_73 : f32 to vector<8x512xf32>
    %151 = arith.maximumf %149, %150 : vector<8x512xf32>
    %c0_74 = arith.constant 0 : index
    %c0_75 = arith.constant 0 : index
    %152 = vector.load %arg7[%c0_74, %c0_75] : memref<8x512xf32, #tpu.memory_space<vmem>>, vector<8x512xf32>
    tpu.vector_store %arg7[%c0_74, %c0_75], %151 {strides = array<i32>} : memref<8x512xf32, #tpu.memory_space<vmem>>, vector<8x512xf32>,
    return
  }
  func.func @transform_0(%arg0: i32) -> (i32, i32) {
    %c0_i32 = arith.constant 0 : i32
    %c0_i32_0 = arith.constant 0 : i32
    return %c0_i32, %arg0 : i32, i32
  }
  func.func @transform_1(%arg0: i32) -> (i32, i32) {
    %c0_i32 = arith.constant 0 : i32
    %c0_i32_0 = arith.constant 0 : i32
    %c0_i32_1 = arith.constant 0 : i32
    return %c0_i32, %c0_i32_0 : i32, i32
  }
  func.func @transform_2(%arg0: i32) -> (i32, i32, i32) {
    %c0_i32 = arith.constant 0 : i32
    %c0_i32_0 = arith.constant 0 : i32
    %c0_i32_1 = arith.constant 0 : i32
    %c0_i32_2 = arith.constant 0 : i32
    return %c0_i32, %c0_i32_0, %c0_i32_1 : i32, i32, i32
  }
  func.func @transform_3(%arg0: i32) -> (i32, i32) {
    %c0_i32 = arith.constant 0 : i32
    %c0_i32_0 = arith.constant 0 : i32
    %c0_i32_1 = arith.constant 0 : i32
    return %c0_i32, %c0_i32_0 : i32, i32
  }
  func.func @transform_4(%arg0: i32) -> (i32, i32, i32) {
    %c0_i32 = arith.constant 0 : i32
    %c0_i32_0 = arith.constant 0 : i32
    %c0_i32_1 = arith.constant 0 : i32
    %c0_i32_2 = arith.constant 0 : i32
    return %c0_i32, %c0_i32_0, %c0_i32_1 : i32, i32, i32
  }
  func.func @transform_5(%arg0: i32) -> (i32, i32) {
    %c0_i32 = arith.constant 0 : i32
    %c0_i32_0 = arith.constant 0 : i32
    %c0_i32_1 = arith.constant 0 : i32
    return %c0_i32, %c0_i32_0 : i32, i32
  }
  func.func @transform_6(%arg0: i32) -> (i32, i32) {
    %c0_i32 = arith.constant 0 : i32
    %c0_i32_0 = arith.constant 0 : i32
    return %c0_i32, %arg0 : i32, i32
  }
}

module attributes {stable_mosaic.version = 11 : i64} {
  func.func @_fc_stack_kernel(%arg0: i32, %arg1: memref<2x2048xf32, #tpu.memory_space<vmem>>, %arg2: memref<2048x32xf32, #tpu.memory_space<vmem>>, %arg3: memref<1x32xf32, #tpu.memory_space<vmem>>, %arg4: memref<2x32xf32, #tpu.memory_space<vmem>>, %arg5: memref<32x32xf32, #tpu.memory_space<vmem>>, %arg6: memref<1x32xf32, #tpu.memory_space<vmem>>, %arg7: memref<2x32xf32, #tpu.memory_space<vmem>>, %arg8: memref<2x128xf32, #tpu.memory_space<vmem>>) attributes {dimension_semantics = [#tpu.dimension_semantics<parallel>], iteration_bounds = array<i64: 1>, scalar_prefetch = 0 : i64, scratch_operands = 0 : i64, tpu.core_type = #tpu.core_type<tc>, window_params = [{transform_indices = @transform_0, window_bounds = array<i64: 2, 2048>}, {pipeline_mode = #tpu.pipeline_mode<synchronous>, transform_indices = @transform_1, window_bounds = array<i64: 2048, 32>}, {pipeline_mode = #tpu.pipeline_mode<synchronous>, transform_indices = @transform_2, window_bounds = array<i64: 1, 32>}, {transform_indices = @transform_3, window_bounds = array<i64: 2, 32>}, {pipeline_mode = #tpu.pipeline_mode<synchronous>, transform_indices = @transform_4, window_bounds = array<i64: 32, 32>}, {pipeline_mode = #tpu.pipeline_mode<synchronous>, transform_indices = @transform_5, window_bounds = array<i64: 1, 32>}, {transform_indices = @transform_6, window_bounds = array<i64: 2, 32>}, {transform_indices = @transform_7, window_bounds = array<i64: 2, 128>}]} {
    %c0 = arith.constant 0 : index
    %c0_0 = arith.constant 0 : index
    %0 = vector.load %arg1[%c0, %c0_0] : memref<2x2048xf32, #tpu.memory_space<vmem>>, vector<2x2048xf32>
    %c0_1 = arith.constant 0 : index
    %c0_2 = arith.constant 0 : index
    %1 = vector.load %arg2[%c0_1, %c0_2] : memref<2048x32xf32, #tpu.memory_space<vmem>>, vector<2048x32xf32>
    %cst = arith.constant dense<0.000000e+00> : vector<2x32xf32>
    %2 = tpu.matmul %0, %1, %cst {dimension_numbers = #tpu.dot_dimension_numbers<[1], [0], [0], [1], [0, 0, 1, 1], [], []>} : vector<2x2048xf32>, vector<2048x32xf32>, vector<2x32xf32> -> vector<2x32xf32>
    %c0_3 = arith.constant 0 : index
    %c0_4 = arith.constant 0 : index
    %3 = vector.load %arg3[%c0_3, %c0_4] : memref<1x32xf32, #tpu.memory_space<vmem>>, vector<1x32xf32>
    %4 = vector.broadcast %3 : vector<1x32xf32> to vector<2x32xf32>
    %5 = arith.addf %2, %4 : vector<2x32xf32>
    %c0_5 = arith.constant 0 : index
    %c0_6 = arith.constant 0 : index
    %6 = vector.load %arg4[%c0_5, %c0_6] : memref<2x32xf32, #tpu.memory_space<vmem>>, vector<2x32xf32>
    %7 = arith.mulf %5, %6 : vector<2x32xf32>
    %cst_7 = arith.constant 0.000000e+00 : f32
    %8 = vector.broadcast %cst_7 : f32 to vector<2x32xf32>
    %9 = arith.maximumf %7, %8 : vector<2x32xf32>
    %c0_8 = arith.constant 0 : index
    %c0_9 = arith.constant 0 : index
    %10 = vector.load %arg5[%c0_8, %c0_9] : memref<32x32xf32, #tpu.memory_space<vmem>>, vector<32x32xf32>
    %cst_10 = arith.constant dense<0.000000e+00> : vector<2x32xf32>
    %11 = tpu.matmul %9, %10, %cst_10 {dimension_numbers = #tpu.dot_dimension_numbers<[1], [0], [0], [1], [0, 0, 1, 1], [], []>} : vector<2x32xf32>, vector<32x32xf32>, vector<2x32xf32> -> vector<2x32xf32>
    %c0_11 = arith.constant 0 : index
    %c0_12 = arith.constant 0 : index
    %12 = vector.load %arg6[%c0_11, %c0_12] : memref<1x32xf32, #tpu.memory_space<vmem>>, vector<1x32xf32>
    %13 = vector.broadcast %12 : vector<1x32xf32> to vector<2x32xf32>
    %14 = arith.addf %11, %13 : vector<2x32xf32>
    %c0_13 = arith.constant 0 : index
    %c0_14 = arith.constant 0 : index
    %15 = vector.load %arg7[%c0_13, %c0_14] : memref<2x32xf32, #tpu.memory_space<vmem>>, vector<2x32xf32>
    %16 = arith.mulf %14, %15 : vector<2x32xf32>
    %cst_15 = arith.constant 0.000000e+00 : f32
    %17 = vector.broadcast %cst_15 : f32 to vector<2x32xf32>
    %18 = arith.maximumf %16, %17 : vector<2x32xf32>
    %cst_16 = arith.constant 0.000000e+00 : f32
    %19 = vector.broadcast %cst_16 : f32 to vector<2x96xf32>
    %20 = tpu.concatenate %18, %19 in 1 : vector<2x32xf32>, vector<2x96xf32> -> vector<2x128xf32>
    %c0_17 = arith.constant 0 : index
    %c0_18 = arith.constant 0 : index
    %21 = vector.load %arg8[%c0_17, %c0_18] : memref<2x128xf32, #tpu.memory_space<vmem>>, vector<2x128xf32>
    tpu.vector_store %arg8[%c0_17, %c0_18], %20 {strides = array<i32>} : memref<2x128xf32, #tpu.memory_space<vmem>>, vector<2x128xf32>,
    return
  }
  func.func @transform_0(%arg0: i32) -> (i32, i32) {
    %c0_i32 = arith.constant 0 : i32
    %c0_i32_0 = arith.constant 0 : i32
    return %arg0, %c0_i32 : i32, i32
  }
  func.func @transform_1(%arg0: i32) -> (i32, i32) {
    %c0_i32 = arith.constant 0 : i32
    %c0_i32_0 = arith.constant 0 : i32
    %c0_i32_1 = arith.constant 0 : i32
    return %c0_i32, %c0_i32_0 : i32, i32
  }
  func.func @transform_2(%arg0: i32) -> (i32, i32) {
    %c0_i32 = arith.constant 0 : i32
    %c0_i32_0 = arith.constant 0 : i32
    %c0_i32_1 = arith.constant 0 : i32
    return %c0_i32, %c0_i32_0 : i32, i32
  }
  func.func @transform_3(%arg0: i32) -> (i32, i32) {
    %c0_i32 = arith.constant 0 : i32
    %c0_i32_0 = arith.constant 0 : i32
    return %arg0, %c0_i32 : i32, i32
  }
  func.func @transform_4(%arg0: i32) -> (i32, i32) {
    %c0_i32 = arith.constant 0 : i32
    %c0_i32_0 = arith.constant 0 : i32
    %c0_i32_1 = arith.constant 0 : i32
    return %c0_i32, %c0_i32_0 : i32, i32
  }
  func.func @transform_5(%arg0: i32) -> (i32, i32) {
    %c0_i32 = arith.constant 0 : i32
    %c0_i32_0 = arith.constant 0 : i32
    %c0_i32_1 = arith.constant 0 : i32
    return %c0_i32, %c0_i32_0 : i32, i32
  }
  func.func @transform_6(%arg0: i32) -> (i32, i32) {
    %c0_i32 = arith.constant 0 : i32
    %c0_i32_0 = arith.constant 0 : i32
    return %arg0, %c0_i32 : i32, i32
  }
  func.func @transform_7(%arg0: i32) -> (i32, i32) {
    %c0_i32 = arith.constant 0 : i32
    %c0_i32_0 = arith.constant 0 : i32
    return %arg0, %c0_i32 : i32, i32
  }
}

</mosaic_0001>

<bundles_post_ra>
// kernel: dropout_fastrcnn_convfc_head.3
= control target key start
LH: loop header
LB: loop body
LE: loop exit
PB: predicated region body
PF: predicated region fallthrough
CT: control target
= control target key end

     0   :  { %v1378_v30 = vmov 1983009808   ;;  %v302_v32 = vlaneseq  ;;  %s2239_s0 = inlined_call_operand.vmem [shape: f32[2,2048], index: 0, kind: input, shape index: {}]   ;;  %s2240_s1 = inlined_call_operand.vmem [shape: f32[2048,32], index: 1, kind: input, shape index: {}]   ;;  %s2241_s2 = inlined_call_operand.vmem [shape: f32[1,32], index: 2, kind: input, shape index: {}]   ;;  %s2242_s3 = inlined_call_operand.vmem [shape: f32[2,32], index: 3, kind: input, shape index: {}]   ;;  %s2243_s4 = inlined_call_operand.vmem [shape: f32[32,32], index: 4, kind: input, shape index: {}]   ;;  %s2244_s5 = inlined_call_operand.vmem [shape: f32[1,32], index: 5, kind: input, shape index: {}]   ;;  %s2245_s6 = inlined_call_operand.vmem [shape: f32[2,32], index: 6, kind: input, shape index: {}]   ;;  %s2246_s7 = inlined_call_operand.hbm [shape: f32[2,128], index: 7, kind: output, shape index: {}]  }
   0x1   :  { %v62_v0 = vld [vmem:[%s2240_s1 + $0xf8] sm:$0xff]  ;;  %v61_v4 = vld [vmem:[%s2240_s1 + $0xf0] sm:$0xff]  ;;  %v60_v8 = vld [vmem:[%s2240_s1 + $0xe8] sm:$0xff]  ;;  %v300_v31 = vunpack.c.l.s4 %v1378_v30 }
   0x2   :  { %v94_v1 = vld [vmem:[%s2240_s1 + $0x1f8] sm:$0xff]  ;;  %1052 = vmatprep.subr.mxu0 %v62_v0  ;;  %v93_v5 = vld [vmem:[%s2240_s1 + $0x1f0] sm:$0xff]  ;;  %v92_v9 = vld [vmem:[%s2240_s1 + $0x1e8] sm:$0xff]  ;;  %v303_v42 = vshrl.u32 %v302_v32, 7 }
   0x3   :  { %v46_v2 = vld [vmem:[%s2240_s1 + $0x78] sm:$0xff]  ;;  %1087 = vmatprep.subr.mxu1 %v94_v1  ;;  %v45_v6 = vld [vmem:[%s2240_s1 + $0x70] sm:$0xff]  ;;  %v44_v10 = vld [vmem:[%s2240_s1 + $0x68] sm:$0xff]  ;;  %v301_v41 = vunpack.c.0.s8 %v300_v31 }
   0x4   :  { %v78_v3 = vld [vmem:[%s2240_s1 + $0x178] sm:$0xff]  ;;  %1053 = vmatpush3.msra.mxu0 %v46_v2  ;;  %v77_v7 = vld [vmem:[%s2240_s1 + $0x170] sm:$0xff]  ;;  %v76_v11 = vld [vmem:[%s2240_s1 + $0x168] sm:$0xff] }
   0x5   :  { %1088 = vmatpush3.msra.mxu1 %v78_v3  ;;  %1054 = vmatprep.subr.mxu0 %v61_v4  ;;  %v59_v12 = vld [vmem:[%s2240_s1 + $0xe0] sm:$0xff]  ;;  %v58_v16 = vld [vmem:[%s2240_s1 + $0xd8] sm:$0xff]  ;;  %v57_v20 = vld [vmem:[%s2240_s1 + $0xd0] sm:$0xff]  ;;  %v1560_v51 = vsub.s32 %v301_v41, %v303_v42 }
   0x6   :  { %1089 = vmatprep.subr.mxu1 %v93_v5  ;;  %1055 = vmatpush3.msra.mxu0 %v45_v6  ;;  %v91_v13 = vld [vmem:[%s2240_s1 + $0x1e0] sm:$0xff]  ;;  %v90_v17 = vld [vmem:[%s2240_s1 + $0x1d8] sm:$0xff]  ;;  %v89_v21 = vld [vmem:[%s2240_s1 + $0x1d0] sm:$0xff] }
   0x7   :  { %1090 = vmatpush3.msra.mxu1 %v77_v7  ;;  %1056 = vmatprep.subr.mxu0 %v60_v8  ;;  %v43_v14 = vld [vmem:[%s2240_s1 + $0x60] sm:$0xff]  ;;  %v42_v18 = vld [vmem:[%s2240_s1 + $0x58] sm:$0xff]  ;;  %v41_v22 = vld [vmem:[%s2240_s1 + $0x50] sm:$0xff] }
   0x8   :  { %1091 = vmatprep.subr.mxu1 %v92_v9  ;;  %v75_v15 = vld [vmem:[%s2240_s1 + $0x160] sm:$0xff]  ;;  %1057 = vmatpush3.msra.mxu0 %v44_v10  ;;  %v74_v19 = vld [vmem:[%s2240_s1 + $0x158] sm:$0xff]  ;;  %v73_v23 = vld [vmem:[%s2240_s1 + $0x150] sm:$0xff] }
   0x9   :  { %1092 = vmatpush3.msra.mxu1 %v76_v11  ;;  %1058 = vmatprep.subr.mxu0 %v59_v12  ;;  %v56_v24 = vld [vmem:[%s2240_s1 + $0xc8] sm:$0xff]  ;;  %v55_v28 = vld [vmem:[%s2240_s1 + $0xc0] sm:$0xff]  ;;  %v54_v35 = vld [vmem:[%s2240_s1 + $0xb8] sm:$0xff] }
   0xa   :  { %1093 = vmatprep.subr.mxu1 %v91_v13  ;;  %1059 = vmatpush3.msra.mxu0 %v43_v14  ;;  %v88_v25 = vld [vmem:[%s2240_s1 + $0x1c8] sm:$0xff]  ;;  %v87_v29 = vld [vmem:[%s2240_s1 + $0x1c0] sm:$0xff]  ;;  %v86_v36 = vld [vmem:[%s2240_s1 + $0x1b8] sm:$0xff] }
   0xb   :  { %1094 = vmatpush3.msra.mxu1 %v75_v15  ;;  %1060 = vmatprep.subr.mxu0 %v58_v16  ;;  %v40_v26 = vld [vmem:[%s2240_s1 + $0x48] sm:$0xff]  ;;  %v39_v33 = vld [vmem:[%s2240_s1 + $0x40] sm:$0xff]  ;;  %v38_v37 = vld [vmem:[%s2240_s1 + $0x38] sm:$0xff] }
   0xc   :  { %1095 = vmatprep.subr.mxu1 %v90_v17  ;;  %1061 = vmatpush3.msra.mxu0 %v42_v18  ;;  %v72_v27 = vld [vmem:[%s2240_s1 + $0x148] sm:$0xff]  ;;  %v71_v34 = vld [vmem:[%s2240_s1 + $0x140] sm:$0xff]  ;;  %v70_v38 = vld [vmem:[%s2240_s1 + $0x138] sm:$0xff] }
   0xd   :  { %1096 = vmatpush3.msra.mxu1 %v74_v19  ;;  %1062 = vmatprep.subr.mxu0 %v57_v20  ;;  %v53_v39 = vld [vmem:[%s2240_s1 + $0xb0] sm:$0xff]  ;;  %v52_v45 = vld [vmem:[%s2240_s1 + $0xa8] sm:$0xff]  ;;  %v51_v49 = vld [vmem:[%s2240_s1 + $0xa0] sm:$0xff] }
   0xe   :  { %1097 = vmatprep.subr.mxu1 %v89_v21  ;;  %1063 = vmatpush3.msra.mxu0 %v41_v22  ;;  %v85_v40 = vld [vmem:[%s2240_s1 + $0x1b0] sm:$0xff]  ;;  %v84_v46 = vld [vmem:[%s2240_s1 + $0x1a8] sm:$0xff]  ;;  %v83_v50 = vld [vmem:[%s2240_s1 + $0x1a0] sm:$0xff] }
   0xf   :  { %1098 = vmatpush3.msra.mxu1 %v73_v23  ;;  %1064 = vmatprep.subr.mxu0 %v56_v24  ;;  %v37_v43 = vld [vmem:[%s2240_s1 + $0x30] sm:$0xff]  ;;  %v36_v47 = vld [vmem:[%s2240_s1 + $0x28] sm:$0xff]  ;;  %v35_v52 = vld [vmem:[%s2240_s1 + $0x20] sm:$0xff] }
  0x10   :  { %1099 = vmatprep.subr.mxu1 %v88_v25  ;;  %1065 = vmatpush3.msra.mxu0 %v40_v26  ;;  %v69_v44 = vld [vmem:[%s2240_s1 + $0x130] sm:$0xff]  ;;  %v68_v48 = vld [vmem:[%s2240_s1 + $0x128] sm:$0xff]  ;;  %v67_v53 = vld [vmem:[%s2240_s1 + $0x120] sm:$0xff] }
  0x11   :  { %1100 = vmatpush3.msra.mxu1 %v72_v27  ;;  %1066 = vmatprep.subr.mxu0 %v55_v28  ;;  %v27_v54 = vld [vmem:[%s2239_s0] sm:$0xff]  ;;  %v50_v55 = vld [vmem:[%s2240_s1 + $0x98] sm:$0xff]  ;;  %v49_v60 = vld [vmem:[%s2240_s1 + $0x90] sm:$0xff] }
  0x12   :  { %1101 = vmatprep.subr.mxu1 %v87_v29  ;;  %1067 = vmatpush3.msra.mxu0 %v39_v33  ;;  %v82_v56 = vld [vmem:[%s2240_s1 + $0x198] sm:$0xff]  ;;  %v298_v57 = vcombine.high %v27_v54, %v27_v54  ;;  %v81_v61 = vld [vmem:[%s2240_s1 + $0x190] sm:$0xff]  ;;  %v305_v62 = vrot.slane %v27_v54, %v1560_v51  ;;  %v48_v1 = vld [vmem:[%s2240_s1 + $0x88] sm:$0xff] }
  0x13   :  { %1102 = vmatpush3.msra.mxu1 %v71_v34  ;;  %1068 = vmatprep.subr.mxu0 %v54_v35  ;;  %v34_v58 = vld [vmem:[%s2240_s1 + $0x18] sm:$0xff]  ;;  %v33_v63 = vld [vmem:[%s2240_s1 + $0x10] sm:$0xff]  ;;  %v80_v2 = vld [vmem:[%s2240_s1 + $0x188] sm:$0xff] }
  0x14   :  { %1103 = vmatprep.subr.mxu1 %v86_v36  ;;  %1069 = vmatpush3.msra.mxu0 %v38_v37  ;;  %v66_v59 = vld [vmem:[%s2240_s1 + $0x118] sm:$0xff]  ;;  %v65_v0 = vld [vmem:[%s2240_s1 + $0x110] sm:$0xff]  ;;  %v312_v3 = vrot.slane %v298_v57, %v1560_v51  ;;  %v32_v4 = vld [vmem:[%s2240_s1 + $0x8] sm:$0xff]  ;;  %v313_v8 = vcombine.high %v305_v62, %v305_v62 }
  0x15   :  { %1104 = vmatpush3.msra.mxu1 %v70_v38  ;;  %1070 = vmatprep.subr.mxu0 %v53_v39  ;;  %v64_v5 = vld [vmem:[%s2240_s1 + $0x108] sm:$0xff]  ;;  %v47_v6 = vld [vmem:[%s2240_s1 + $0x80] sm:$0xff]  ;;  %v126_v12 = vld [vmem:[%s2240_s1 + $0x2f8] sm:$0xff] }
  0x16   :  { %1105 = vmatprep.subr.mxu1 %v85_v40  ;;  %1071 = vmatpush3.msra.mxu0 %v37_v43  ;;  %v79_v7 = vld [vmem:[%s2240_s1 + $0x180] sm:$0xff]  ;;  %v314_v11 = vcombine.high %v312_v3, %v312_v3  ;;  %v158_v13 = vld [vmem:[%s2240_s1 + $0x3f8] sm:$0xff]  ;;  %v125_v16 = vld [vmem:[%s2240_s1 + $0x2f0] sm:$0xff] }
  0x17   :  { %1106 = vmatpush3.msra.mxu1 %v69_v44  ;;  %1072 = vmatprep.subr.mxu0 %v52_v45  ;;  %v31_v9 = vld [vmem:[%s2240_s1] sm:$0xff]  ;;  %v110_v14 = vld [vmem:[%s2240_s1 + $0x278] sm:$0xff]  ;;  %v157_v17 = vld [vmem:[%s2240_s1 + $0x3f0] sm:$0xff] }
  0x18   :  { %1107 = vmatprep.subr.mxu1 %v84_v46  ;;  %1073 = vmatpush3.msra.mxu0 %v36_v47  ;;  %v63_v10 = vld [vmem:[%s2240_s1 + $0x100] sm:$0xff]  ;;  %v142_v15 = vld [vmem:[%s2240_s1 + $0x378] sm:$0xff]  ;;  %v109_v18 = vld [vmem:[%s2240_s1 + $0x270] sm:$0xff] }
  0x19   :  { %1108 = vmatpush3.msra.mxu1 %v68_v48  ;;  %1074 = vmatprep.subr.mxu0 %v51_v49  ;;  %v141_v19 = vld [vmem:[%s2240_s1 + $0x370] sm:$0xff]  ;;  %v124_v20 = vld [vmem:[%s2240_s1 + $0x2e8] sm:$0xff]  ;;  %v123_v24 = vld [vmem:[%s2240_s1 + $0x2e0] sm:$0xff] }
  0x1a   :  { %1109 = vmatprep.subr.mxu1 %v83_v50  ;;  %1075 = vmatpush3.msra.mxu0 %v35_v52  ;;  %v156_v21 = vld [vmem:[%s2240_s1 + $0x3e8] sm:$0xff]  ;;  %v155_v25 = vld [vmem:[%s2240_s1 + $0x3e0] sm:$0xff]  ;;  %v122_v28 = vld [vmem:[%s2240_s1 + $0x2d8] sm:$0xff] }
  0x1b   :  { %1110 = vmatpush3.msra.mxu1 %v67_v53  ;;  %1076 = vmatprep.subr.mxu0 %v50_v55  ;;  %v108_v22 = vld [vmem:[%s2240_s1 + $0x268] sm:$0xff]  ;;  %v107_v26 = vld [vmem:[%s2240_s1 + $0x260] sm:$0xff]  ;;  %v154_v29 = vld [vmem:[%s2240_s1 + $0x3d8] sm:$0xff] }
  0x1c   :  { %1111 = vmatprep.subr.mxu1 %v82_v56  ;;  %1077 = vmatpush3.msra.mxu0 %v34_v58  ;;  %v140_v23 = vld [vmem:[%s2240_s1 + $0x368] sm:$0xff]  ;;  %v139_v27 = vld [vmem:[%s2240_s1 + $0x360] sm:$0xff]  ;;  %v106_v30 = vld [vmem:[%s2240_s1 + $0x258] sm:$0xff] }
  0x1d   :  { %1112 = vmatpush3.msra.mxu1 %v66_v59  ;;  %1078 = vmatprep.subr.mxu0 %v49_v60  ;;  %v138_v31 = vld [vmem:[%s2240_s1 + $0x358] sm:$0xff]  ;;  %v121_v32 = vld [vmem:[%s2240_s1 + $0x2d0] sm:$0xff]  ;;  %v120_v36 = vld [vmem:[%s2240_s1 + $0x2c8] sm:$0xff] }
  0x1e   :  { %1113 = vmatprep.subr.mxu1 %v81_v61  ;;  %1079 = vmatpush3.msra.mxu0 %v33_v63  ;;  %v153_v33 = vld [vmem:[%s2240_s1 + $0x3d0] sm:$0xff]  ;;  %v152_v37 = vld [vmem:[%s2240_s1 + $0x3c8] sm:$0xff]  ;;  %v119_v40 = vld [vmem:[%s2240_s1 + $0x2c0] sm:$0xff] }
  0x1f   :  { %1114 = vmatpush3.msra.mxu1 %v65_v0  ;;  %1080 = vmatprep.subr.mxu0 %v48_v1  ;;  %v105_v34 = vld [vmem:[%s2240_s1 + $0x250] sm:$0xff]  ;;  %v104_v38 = vld [vmem:[%s2240_s1 + $0x248] sm:$0xff]  ;;  %v151_v41 = vld [vmem:[%s2240_s1 + $0x3c0] sm:$0xff] }
  0x20   :  { %1115 = vmatprep.subr.mxu1 %v80_v2  ;;  %1081 = vmatpush3.msra.mxu0 %v32_v4  ;;  %v137_v35 = vld [vmem:[%s2240_s1 + $0x350] sm:$0xff]  ;;  %v136_v39 = vld [vmem:[%s2240_s1 + $0x348] sm:$0xff]  ;;  %v103_v42 = vld [vmem:[%s2240_s1 + $0x240] sm:$0xff] }
  0x21   :  { %1116 = vmatpush3.msra.mxu1 %v64_v5  ;;  %1082 = vmatprep.subr.mxu0 %v47_v6  ;;  %v135_v43 = vld [vmem:[%s2240_s1 + $0x340] sm:$0xff]  ;;  %v118_v44 = vld [vmem:[%s2240_s1 + $0x2b8] sm:$0xff]  ;;  %v117_v48 = vld [vmem:[%s2240_s1 + $0x2b0] sm:$0xff] }
  0x22   :  { %1117 = vmatprep.subr.mxu1 %v79_v7  ;;  %1083 = vmatpush3.msra.mxu0 %v31_v9  ;;  %v150_v45 = vld [vmem:[%s2240_s1 + $0x3b8] sm:$0xff]  ;;  %v149_v49 = vld [vmem:[%s2240_s1 + $0x3b0] sm:$0xff]  ;;  %v116_v53 = vld [vmem:[%s2240_s1 + $0x2a8] sm:$0xff] }
  0x23   :  { %446 = vmatprep.mubr.f32.mxu0 %v313_v8  ;;  %1118 = vmatpush3.msra.mxu1 %v63_v10  ;;  %v102_v46 = vld [vmem:[%s2240_s1 + $0x238] sm:$0xff]  ;;  %v101_v50 = vld [vmem:[%s2240_s1 + $0x230] sm:$0xff]  ;;  %v148_v54 = vld [vmem:[%s2240_s1 + $0x3a8] sm:$0xff] }
  0x24   :  { %447 = vmatmul.mubr.f32.vlgmr.msra.gmra.mxu0 %v305_v62  ;;  %516 = vmatprep.mubr.f32.mxu1 %v314_v11  ;;  %v134_v47 = vld [vmem:[%s2240_s1 + $0x338] sm:$0xff]  ;;  %v133_v52 = vld [vmem:[%s2240_s1 + $0x330] sm:$0xff]  ;;  %v100_v55 = vld [vmem:[%s2240_s1 + $0x228] sm:$0xff] }
  0x25   :  { %1122 = vmatprep.subr.mxu0 %v126_v12  ;;  %1157 = vmatprep.subr.mxu1 %v158_v13  ;;  %v132_v56 = vld [vmem:[%s2240_s1 + $0x328] sm:$0xff]  ;;  %v115_v58 = vld [vmem:[%s2240_s1 + $0x2a0] sm:$0xff]  ;;  %v114_v62 = vld [vmem:[%s2240_s1 + $0x298] sm:$0xff] }
  0x26   :  { %517 = vmatmul.mubr.f32.vlgmr.msra.gmra.mxu1 %v312_v3  ;;  %1123 = vmatpush3.msra.mxu0 %v110_v14  ;;  %v28_v57 = vld [vmem:[%s2239_s0 + $0x8] sm:$0xff]  ;;  %v147_v59 = vld [vmem:[%s2240_s1 + $0x3a0] sm:$0xff]  ;;  %v146_v63 = vld [vmem:[%s2240_s1 + $0x398] sm:$0xff] }
  0x27   :  { %1158 = vmatpush3.msra.mxu1 %v142_v15  ;;  %1124 = vmatprep.subr.mxu0 %v125_v16  ;;  %v99_v60 = vld [vmem:[%s2240_s1 + $0x220] sm:$0xff]  ;;  %v315_v0 = vcombine.high %v28_v57, %v28_v57  ;;  %v98_v1 = vld [vmem:[%s2240_s1 + $0x218] sm:$0xff]  ;;  %v113_v3 = vld [vmem:[%s2240_s1 + $0x290] sm:$0xff]  ;;  %v322_v5 = vrot.slane %v28_v57, %v1560_v51 }
  0x28   :  { %1159 = vmatprep.subr.mxu1 %v157_v17  ;;  %1125 = vmatpush3.msra.mxu0 %v109_v18  ;;  %v131_v61 = vld [vmem:[%s2240_s1 + $0x320] sm:$0xff]  ;;  %v130_v2 = vld [vmem:[%s2240_s1 + $0x318] sm:$0xff]  ;;  %v145_v4 = vld [vmem:[%s2240_s1 + $0x390] sm:$0xff] }
  0x29   :  { %1160 = vmatpush3.msra.mxu1 %v141_v19  ;;  %1126 = vmatprep.subr.mxu0 %v124_v20  ;;  %v97_v6 = vld [vmem:[%s2240_s1 + $0x210] sm:$0xff]  ;;  %v112_v8 = vld [vmem:[%s2240_s1 + $0x288] sm:$0xff]  ;;  %v329_v10 = vrot.slane %v315_v0, %v1560_v51  ;;  %v111_v13 = vld [vmem:[%s2240_s1 + $0x280] sm:$0xff]  ;;  %v330_v15 = vcombine.high %v322_v5, %v322_v5 }
  0x2a   :  { %1161 = vmatprep.subr.mxu1 %v156_v21  ;;  %1127 = vmatpush3.msra.mxu0 %v108_v22  ;;  %v129_v7 = vld [vmem:[%s2240_s1 + $0x310] sm:$0xff]  ;;  %v144_v9 = vld [vmem:[%s2240_s1 + $0x388] sm:$0xff]  ;;  %v143_v14 = vld [vmem:[%s2240_s1 + $0x380] sm:$0xff] }
  0x2b   :  { %1162 = vmatpush3.msra.mxu1 %v140_v23  ;;  %1128 = vmatprep.subr.mxu0 %v123_v24  ;;  %v96_v11 = vld [vmem:[%s2240_s1 + $0x208] sm:$0xff]  ;;  %v95_v16 = vld [vmem:[%s2240_s1 + $0x200] sm:$0xff]  ;;  %v331_v18 = vcombine.high %v329_v10, %v329_v10  ;;  %v190_v19 = vld [vmem:[%s2240_s1 + $0x4f8] sm:$0xff] }
  0x2c   :  { %1163 = vmatprep.subr.mxu1 %v155_v25  ;;  %1129 = vmatpush3.msra.mxu0 %v107_v26  ;;  %v128_v12 = vld [vmem:[%s2240_s1 + $0x308] sm:$0xff]  ;;  %v127_v17 = vld [vmem:[%s2240_s1 + $0x300] sm:$0xff]  ;;  %v222_v20 = vld [vmem:[%s2240_s1 + $0x5f8] sm:$0xff] }
  0x2d   :  { %1164 = vmatpush3.msra.mxu1 %v139_v27  ;;  %1130 = vmatprep.subr.mxu0 %v122_v28  ;;  %v174_v21 = vld [vmem:[%s2240_s1 + $0x478] sm:$0xff]  ;;  %v189_v23 = vld [vmem:[%s2240_s1 + $0x4f0] sm:$0xff]  ;;  %v188_v27 = vld [vmem:[%s2240_s1 + $0x4e8] sm:$0xff] }
  0x2e   :  { %1165 = vmatprep.subr.mxu1 %v154_v29  ;;  %1131 = vmatpush3.msra.mxu0 %v106_v30  ;;  %v206_v22 = vld [vmem:[%s2240_s1 + $0x578] sm:$0xff]  ;;  %v221_v24 = vld [vmem:[%s2240_s1 + $0x5f0] sm:$0xff]  ;;  %v220_v28 = vld [vmem:[%s2240_s1 + $0x5e8] sm:$0xff] }
  0x2f   :  { %1166 = vmatpush3.msra.mxu1 %v138_v31  ;;  %1132 = vmatprep.subr.mxu0 %v121_v32  ;;  %v173_v25 = vld [vmem:[%s2240_s1 + $0x470] sm:$0xff]  ;;  %v172_v29 = vld [vmem:[%s2240_s1 + $0x468] sm:$0xff]  ;;  %v187_v31 = vld [vmem:[%s2240_s1 + $0x4e0] sm:$0xff] }
  0x30   :  { %1167 = vmatprep.subr.mxu1 %v153_v33  ;;  %1133 = vmatpush3.msra.mxu0 %v105_v34  ;;  %v205_v26 = vld [vmem:[%s2240_s1 + $0x570] sm:$0xff]  ;;  %v204_v30 = vld [vmem:[%s2240_s1 + $0x568] sm:$0xff]  ;;  %v219_v32 = vld [vmem:[%s2240_s1 + $0x5e0] sm:$0xff] }
  0x31   :  { %1168 = vmatpush3.msra.mxu1 %v137_v35  ;;  %1134 = vmatprep.subr.mxu0 %v120_v36  ;;  %v171_v33 = vld [vmem:[%s2240_s1 + $0x460] sm:$0xff]  ;;  %v186_v35 = vld [vmem:[%s2240_s1 + $0x4d8] sm:$0xff]  ;;  %v213_v57 = vld [vmem:[%s2240_s1 + $0x5b0] sm:$0xff] }
  0x32   :  { %1169 = vmatprep.subr.mxu1 %v152_v37  ;;  %1135 = vmatpush3.msra.mxu0 %v104_v38  ;;  %v203_v34 = vld [vmem:[%s2240_s1 + $0x560] sm:$0xff]  ;;  %v218_v36 = vld [vmem:[%s2240_s1 + $0x5d8] sm:$0xff] }
  0x33   :  { %1170 = vmatpush3.msra.mxu1 %v136_v39  ;;  %1136 = vmatprep.subr.mxu0 %v119_v40  ;;  %v170_v37 = vld [vmem:[%s2240_s1 + $0x458] sm:$0xff]  ;;  %v185_v39 = vld [vmem:[%s2240_s1 + $0x4d0] sm:$0xff] }
  0x34   :  { %1171 = vmatprep.subr.mxu1 %v151_v41  ;;  %1137 = vmatpush3.msra.mxu0 %v103_v42  ;;  %v202_v38 = vld [vmem:[%s2240_s1 + $0x558] sm:$0xff]  ;;  %v217_v40 = vld [vmem:[%s2240_s1 + $0x5d0] sm:$0xff] }
  0x35   :  { %1172 = vmatpush3.msra.mxu1 %v135_v43  ;;  %1138 = vmatprep.subr.mxu0 %v118_v44  ;;  %v169_v41 = vld [vmem:[%s2240_s1 + $0x450] sm:$0xff]  ;;  %v184_v43 = vld [vmem:[%s2240_s1 + $0x4c8] sm:$0xff] }
  0x36   :  { %1173 = vmatprep.subr.mxu1 %v150_v45  ;;  %1139 = vmatpush3.msra.mxu0 %v102_v46  ;;  %v201_v42 = vld [vmem:[%s2240_s1 + $0x550] sm:$0xff]  ;;  %v216_v44 = vld [vmem:[%s2240_s1 + $0x5c8] sm:$0xff] }
  0x37   :  { %1174 = vmatpush3.msra.mxu1 %v134_v47  ;;  %1140 = vmatprep.subr.mxu0 %v117_v48  ;;  %v168_v45 = vld [vmem:[%s2240_s1 + $0x448] sm:$0xff]  ;;  %v183_v47 = vld [vmem:[%s2240_s1 + $0x4c0] sm:$0xff] }
  0x38   :  { %1175 = vmatprep.subr.mxu1 %v149_v49  ;;  %1141 = vmatpush3.msra.mxu0 %v101_v50  ;;  %v200_v46 = vld [vmem:[%s2240_s1 + $0x548] sm:$0xff]  ;;  %v215_v48 = vld [vmem:[%s2240_s1 + $0x5c0] sm:$0xff] }
  0x39   :  { %1176 = vmatpush3.msra.mxu1 %v133_v52  ;;  %1142 = vmatprep.subr.mxu0 %v116_v53  ;;  %v167_v49 = vld [vmem:[%s2240_s1 + $0x440] sm:$0xff]  ;;  %v182_v52 = vld [vmem:[%s2240_s1 + $0x4b8] sm:$0xff] }
  0x3a   :  { %1177 = vmatprep.subr.mxu1 %v148_v54  ;;  %1143 = vmatpush3.msra.mxu0 %v100_v55  ;;  %v199_v50 = vld [vmem:[%s2240_s1 + $0x540] sm:$0xff]  ;;  %v214_v53 = vld [vmem:[%s2240_s1 + $0x5b8] sm:$0xff] }
  0x3b   :  { %1178 = vmatpush3.msra.mxu1 %v132_v56  ;;  %1144 = vmatprep.subr.mxu0 %v115_v58  ;;  %v166_v54 = vld [vmem:[%s2240_s1 + $0x438] sm:$0xff]  ;;  %v181_v56 = vld [vmem:[%s2240_s1 + $0x4b0] sm:$0xff] }
  0x3c   :  { %1179 = vmatprep.subr.mxu1 %v147_v59  ;;  %1145 = vmatpush3.msra.mxu0 %v99_v60  ;;  %v198_v55 = vld [vmem:[%s2240_s1 + $0x538] sm:$0xff]  ;;  %v165_v58 = vld [vmem:[%s2240_s1 + $0x430] sm:$0xff]  ;;  %v180_v60 = vld [vmem:[%s2240_s1 + $0x4a8] sm:$0xff] }
  0x3d   :  { %1180 = vmatpush3.msra.mxu1 %v131_v61  ;;  %1146 = vmatprep.subr.mxu0 %v114_v62  ;;  %v197_v59 = vld [vmem:[%s2240_s1 + $0x530] sm:$0xff]  ;;  %v212_v61 = vld [vmem:[%s2240_s1 + $0x5a8] sm:$0xff] }
  0x3e   :  { %1181 = vmatprep.subr.mxu1 %v146_v63  ;;  %1147 = vmatpush3.msra.mxu0 %v98_v1 }
  0x3f   :  { %1182 = vmatpush3.msra.mxu1 %v130_v2  ;;  %1148 = vmatprep.subr.mxu0 %v113_v3 }
  0x40   :  { %1183 = vmatprep.subr.mxu1 %v145_v4  ;;  %1149 = vmatpush3.msra.mxu0 %v97_v6 }
  0x41   :  { %1184 = vmatpush3.msra.mxu1 %v129_v7  ;;  %1150 = vmatprep.subr.mxu0 %v112_v8 }
  0x42   :  { %1185 = vmatprep.subr.mxu1 %v144_v9  ;;  %1151 = vmatpush3.msra.mxu0 %v96_v11 }
  0x43   :  { %1186 = vmatpush3.msra.mxu1 %v128_v12  ;;  %1152 = vmatprep.subr.mxu0 %v111_v13 }
  0x44   :  { %1187 = vmatprep.subr.mxu1 %v143_v14  ;;  %1153 = vmatpush3.msra.mxu0 %v95_v16 }
  0x45   :  { %586 = vmatprep.mubr.f32.mxu0 %v330_v15  ;;  %1188 = vmatpush3.msra.mxu1 %v127_v17 }
  0x46   :  { %587 = vmatmul.mubr.f32.vlgmr.msra.gmra.mxu0 %v322_v5  ;;  %656 = vmatprep.mubr.f32.mxu1 %v331_v18 }
  0x47   :  { %1192 = vmatprep.subr.mxu0 %v190_v19  ;;  %1227 = vmatprep.subr.mxu1 %v222_v20 }
  0x48   :  { %657 = vmatmul.mubr.f32.vlgmr.msra.gmra.mxu1 %v329_v10  ;;  %1193 = vmatpush3.msra.mxu0 %v174_v21 }
  0x49   :  { %1228 = vmatpush3.msra.mxu1 %v206_v22  ;;  %1194 = vmatprep.subr.mxu0 %v189_v23 }
  0x4a   :  { %1229 = vmatprep.subr.mxu1 %v221_v24  ;;  %1195 = vmatpush3.msra.mxu0 %v173_v25 }
  0x4b   :  { %1230 = vmatpush3.msra.mxu1 %v205_v26  ;;  %1196 = vmatprep.subr.mxu0 %v188_v27 }
  0x4c   :  { %1231 = vmatprep.subr.mxu1 %v220_v28  ;;  %1197 = vmatpush3.msra.mxu0 %v172_v29 }
  0x4d   :  { %1232 = vmatpush3.msra.mxu1 %v204_v30  ;;  %1198 = vmatprep.subr.mxu0 %v187_v31 }
  0x4e   :  { %1233 = vmatprep.subr.mxu1 %v219_v32  ;;  %1199 = vmatpush3.msra.mxu0 %v171_v33 }
  0x4f   :  { %1234 = vmatpush3.msra.mxu1 %v203_v34  ;;  %1200 = vmatprep.subr.mxu0 %v186_v35 }
  0x50   :  { %1235 = vmatprep.subr.mxu1 %v218_v36  ;;  %1201 = vmatpush3.msra.mxu0 %v170_v37 }
  0x51   :  { %1236 = vmatpush3.msra.mxu1 %v202_v38  ;;  %1202 = vmatprep.subr.mxu0 %v185_v39 }
  0x52   :  { %1237 = vmatprep.subr.mxu1 %v217_v40  ;;  %1203 = vmatpush3.msra.mxu0 %v169_v41 }
  0x53   :  { %1238 = vmatpush3.msra.mxu1 %v201_v42  ;;  %1204 = vmatprep.subr.mxu0 %v184_v43 }
  0x54   :  { %1239 = vmatprep.subr.mxu1 %v216_v44  ;;  %1205 = vmatpush3.msra.mxu0 %v168_v45 }
  0x55   :  { %1240 = vmatpush3.msra.mxu1 %v200_v46  ;;  %1206 = vmatprep.subr.mxu0 %v183_v47 }
  0x56   :  { %1241 = vmatprep.subr.mxu1 %v215_v48  ;;  %1207 = vmatpush3.msra.mxu0 %v167_v49 }
  0x57   :  { %1242 = vmatpush3.msra.mxu1 %v199_v50  ;;  %1208 = vmatprep.subr.mxu0 %v182_v52 }
  0x58   :  { %1243 = vmatprep.subr.mxu1 %v214_v53  ;;  %1209 = vmatpush3.msra.mxu0 %v166_v54 }
  0x59   :  { %1244 = vmatpush3.msra.mxu1 %v198_v55 }
  0x5a   :  { %12 = vsyncpa [#allocation3], 0  ;;  %1210 = vmatprep.subr.mxu0 %v181_v56  ;;  %1245 = vmatprep.subr.mxu1 %v213_v57  ;;  %v164_v62 = vld [vmem:[%s2240_s1 + $0x428] sm:$0xff]  ;;  %v29_v0 = vld [vmem:[%s2239_s0 + $0x10] sm:$0xff]  ;;  %vm1380_vm0 = vmmov 0   ;;  %vm956_vm1 = vcmask 261120  }
  0x5b   :  { %v196_v63 = vld [vmem:[%s2240_s1 + $0x528] sm:$0xff]  ;;  %1211 = vmatpush3.msra.mxu0 %v165_v58  ;;  %1246 = vmatpush3.msra.mxu1 %v197_v59  ;;  %v179_v1 = vld [vmem:[%s2240_s1 + $0x4a0] sm:$0xff]  ;;  %v178_v5 = vld [vmem:[%s2240_s1 + $0x498] sm:$0xff]  ;;  %v332_v7 = vcombine.high %v29_v0, %v29_v0  ;;  %v339_v12 = vrot.slane %v29_v0, %v1560_v51  ;;  %s1381_s25 = smov [#allocation2]  }
  0x5c   :  { %v211_v2 = vld [vmem:[%s2240_s1 + $0x5a0] sm:$0xff]  ;;  %1212 = vmatprep.subr.mxu0 %v180_v60  ;;  %1247 = vmatprep.subr.mxu1 %v212_v61  ;;  %v210_v6 = vld [vmem:[%s2240_s1 + $0x598] sm:$0xff]  ;;  %v177_v10 = vld [vmem:[%s2240_s1 + $0x490] sm:$0xff]  ;;  %s1041_s26 = sshll.u32 %s1381_s25, 4  ;;  %s1042_s26 = int_to_ptr.vmem [resolvable:$true] %s1041_s26 }
  0x5d   :  { %v163_v3 = vld [vmem:[%s2240_s1 + $0x420] sm:$0xff]  ;;  %1213 = vmatpush3.msra.mxu0 %v164_v62  ;;  %1248 = vmatpush3.msra.mxu1 %v196_v63  ;;  %v162_v8 = vld [vmem:[%s2240_s1 + $0x418] sm:$0xff]  ;;  %v209_v11 = vld [vmem:[%s2240_s1 + $0x590] sm:$0xff]  ;;  %v346_v17 = vrot.slane %v332_v7, %v1560_v51  ;;  %v347_v22 = vcombine.high %v339_v12, %v339_v12  ;;  %p1361_p1 = scmp.lt.s32.totalorder %s1042_s26, %s1042_s26 }
  0x5e   :  { %v195_v4 = vld [vmem:[%s2240_s1 + $0x520] sm:$0xff]  ;;  %1214 = vmatprep.subr.mxu0 %v179_v1  ;;  %1249 = vmatprep.subr.mxu1 %v211_v2  ;;  %v194_v9 = vld [vmem:[%s2240_s1 + $0x518] sm:$0xff]  ;;  %v161_v13 = vld [vmem:[%s2240_s1 + $0x410] sm:$0xff] }
  0x5f   :  { %1215 = vmatpush3.msra.mxu0 %v163_v3  ;;  %1250 = vmatpush3.msra.mxu1 %v195_v4  ;;  %v193_v14 = vld [vmem:[%s2240_s1 + $0x510] sm:$0xff]  ;;  %v176_v15 = vld [vmem:[%s2240_s1 + $0x488] sm:$0xff]  ;;  %v175_v20 = vld [vmem:[%s2240_s1 + $0x480] sm:$0xff]  ;;  %v348_v25 = vcombine.high %v346_v17, %v346_v17 }
  0x60   :  { %1216 = vmatprep.subr.mxu0 %v178_v5  ;;  %1251 = vmatprep.subr.mxu1 %v210_v6  ;;  %v208_v16 = vld [vmem:[%s2240_s1 + $0x588] sm:$0xff]  ;;  %v207_v21 = vld [vmem:[%s2240_s1 + $0x580] sm:$0xff]  ;;  %v254_v26 = vld [vmem:[%s2240_s1 + $0x6f8] sm:$0xff] }
  0x61   :  { %1217 = vmatpush3.msra.mxu0 %v162_v8  ;;  %1252 = vmatpush3.msra.mxu1 %v194_v9  ;;  %v160_v18 = vld [vmem:[%s2240_s1 + $0x408] sm:$0xff]  ;;  %v159_v23 = vld [vmem:[%s2240_s1 + $0x400] sm:$0xff]  ;;  %v286_v27 = vld [vmem:[%s2240_s1 + $0x7f8] sm:$0xff] }
  0x62   :  { %1218 = vmatprep.subr.mxu0 %v177_v10  ;;  %1253 = vmatprep.subr.mxu1 %v209_v11  ;;  %v192_v19 = vld [vmem:[%s2240_s1 + $0x508] sm:$0xff]  ;;  %v191_v24 = vld [vmem:[%s2240_s1 + $0x500] sm:$0xff]  ;;  %v238_v28 = vld [vmem:[%s2240_s1 + $0x678] sm:$0xff] }
  0x63   :  { %1219 = vmatpush3.msra.mxu0 %v161_v13  ;;  %1254 = vmatpush3.msra.mxu1 %v193_v14  ;;  %v270_v29 = vld [vmem:[%s2240_s1 + $0x778] sm:$0xff]  ;;  %v253_v30 = vld [vmem:[%s2240_s1 + $0x6f0] sm:$0xff]  ;;  %v252_v34 = vld [vmem:[%s2240_s1 + $0x6e8] sm:$0xff] }
  0x64   :  { %1220 = vmatprep.subr.mxu0 %v176_v15  ;;  %1255 = vmatprep.subr.mxu1 %v208_v16  ;;  %v285_v31 = vld [vmem:[%s2240_s1 + $0x7f0] sm:$0xff]  ;;  %v284_v35 = vld [vmem:[%s2240_s1 + $0x7e8] sm:$0xff]  ;;  %v251_v38 = vld [vmem:[%s2240_s1 + $0x6e0] sm:$0xff] }
  0x65   :  { %1221 = vmatpush3.msra.mxu0 %v160_v18  ;;  %1256 = vmatpush3.msra.mxu1 %v192_v19  ;;  %v237_v32 = vld [vmem:[%s2240_s1 + $0x670] sm:$0xff]  ;;  %v236_v36 = vld [vmem:[%s2240_s1 + $0x668] sm:$0xff]  ;;  %v283_v39 = vld [vmem:[%s2240_s1 + $0x7e0] sm:$0xff] }
  0x66   :  { %1222 = vmatprep.subr.mxu0 %v175_v20  ;;  %1257 = vmatprep.subr.mxu1 %v207_v21  ;;  %v269_v33 = vld [vmem:[%s2240_s1 + $0x770] sm:$0xff]  ;;  %v268_v37 = vld [vmem:[%s2240_s1 + $0x768] sm:$0xff]  ;;  %v235_v40 = vld [vmem:[%s2240_s1 + $0x660] sm:$0xff] }
  0x67   :  { %1223 = vmatpush3.msra.mxu0 %v159_v23  ;;  %726 = vmatprep.mubr.f32.mxu0 %v347_v22  ;;  %v267_v41 = vld [vmem:[%s2240_s1 + $0x760] sm:$0xff]  ;;  %v250_v42 = vld [vmem:[%s2240_s1 + $0x6d8] sm:$0xff]  ;;  %v249_v46 = vld [vmem:[%s2240_s1 + $0x6d0] sm:$0xff] }
  0x68   :  { %1258 = vmatpush3.msra.mxu1 %v191_v24  ;;  %727 = vmatmul.mubr.f32.vlgmr.msra.gmra.mxu0 %v339_v12  ;;  %v282_v43 = vld [vmem:[%s2240_s1 + $0x7d8] sm:$0xff]  ;;  %v281_v47 = vld [vmem:[%s2240_s1 + $0x7d0] sm:$0xff]  ;;  %v248_v50 = vld [vmem:[%s2240_s1 + $0x6c8] sm:$0xff] }
  0x69   :  { %796 = vmatprep.mubr.f32.mxu1 %v348_v25  ;;  %1262 = vmatprep.subr.mxu0 %v254_v26  ;;  %v234_v44 = vld [vmem:[%s2240_s1 + $0x658] sm:$0xff]  ;;  %v233_v48 = vld [vmem:[%s2240_s1 + $0x650] sm:$0xff]  ;;  %v280_v52 = vld [vmem:[%s2240_s1 + $0x7c8] sm:$0xff] }
  0x6a   :  { %1297 = vmatprep.subr.mxu1 %v286_v27  ;;  %797 = vmatmul.mubr.f32.vlgmr.msra.gmra.mxu1 %v346_v17  ;;  %v266_v45 = vld [vmem:[%s2240_s1 + $0x758] sm:$0xff]  ;;  %v265_v49 = vld [vmem:[%s2240_s1 + $0x750] sm:$0xff]  ;;  %v232_v53 = vld [vmem:[%s2240_s1 + $0x648] sm:$0xff] }
  0x6b   :  { %1263 = vmatpush3.msra.mxu0 %v238_v28  ;;  %1298 = vmatpush3.msra.mxu1 %v270_v29  ;;  %v264_v54 = vld [vmem:[%s2240_s1 + $0x748] sm:$0xff]  ;;  %v247_v55 = vld [vmem:[%s2240_s1 + $0x6c0] sm:$0xff]  ;;  %v246_v59 = vld [vmem:[%s2240_s1 + $0x6b8] sm:$0xff] }
  0x6c   :  { %1264 = vmatprep.subr.mxu0 %v253_v30  ;;  %1299 = vmatprep.subr.mxu1 %v285_v31  ;;  %v279_v56 = vld [vmem:[%s2240_s1 + $0x7c0] sm:$0xff]  ;;  %v278_v60 = vld [vmem:[%s2240_s1 + $0x7b8] sm:$0xff]  ;;  %v245_v63 = vld [vmem:[%s2240_s1 + $0x6b0] sm:$0xff] }
  0x6d   :  { %1265 = vmatpush3.msra.mxu0 %v237_v32  ;;  %1300 = vmatpush3.msra.mxu1 %v269_v33  ;;  %v231_v57 = vld [vmem:[%s2240_s1 + $0x640] sm:$0xff]  ;;  %v230_v61 = vld [vmem:[%s2240_s1 + $0x638] sm:$0xff]  ;;  %v277_v0 = vld [vmem:[%s2240_s1 + $0x7b0] sm:$0xff]  ;;  %v1379_v32 = vmov 0.0  }
  0x6e   :  { %1266 = vmatprep.subr.mxu0 %v252_v34  ;;  %1301 = vmatprep.subr.mxu1 %v284_v35  ;;  %v263_v58 = vld [vmem:[%s2240_s1 + $0x740] sm:$0xff]  ;;  %v262_v62 = vld [vmem:[%s2240_s1 + $0x738] sm:$0xff]  ;;  %v229_v1 = vld [vmem:[%s2240_s1 + $0x630] sm:$0xff] }
  0x6f   :  { %1267 = vmatpush3.msra.mxu0 %v236_v36  ;;  %1302 = vmatpush3.msra.mxu1 %v268_v37  ;;  %v261_v2 = vld [vmem:[%s2240_s1 + $0x730] sm:$0xff]  ;;  %v244_v3 = vld [vmem:[%s2240_s1 + $0x6a8] sm:$0xff]  ;;  %v30_v5 = vld [vmem:[%s2239_s0 + $0x18] sm:$0xff] }
  0x70   :  { %1268 = vmatprep.subr.mxu0 %v251_v38  ;;  %1303 = vmatprep.subr.mxu1 %v283_v39  ;;  %v276_v4 = vld [vmem:[%s2240_s1 + $0x7a8] sm:$0xff]  ;;  %v243_v8 = vld [vmem:[%s2240_s1 + $0x6a0] sm:$0xff]  ;;  %v349_v12 = vcombine.high %v30_v5, %v30_v5  ;;  %v242_v13 = vld [vmem:[%s2240_s1 + $0x698] sm:$0xff]  ;;  %v356_v19 = vrot.slane %v30_v5, %v1560_v51 }
  0x71   :  { %1269 = vmatpush3.msra.mxu0 %v235_v40  ;;  %1304 = vmatpush3.msra.mxu1 %v267_v41  ;;  %v228_v6 = vld [vmem:[%s2240_s1 + $0x628] sm:$0xff]  ;;  %v275_v9 = vld [vmem:[%s2240_s1 + $0x7a0] sm:$0xff]  ;;  %v274_v14 = vld [vmem:[%s2240_s1 + $0x798] sm:$0xff] }
  0x72   :  { %1270 = vmatprep.subr.mxu0 %v250_v42  ;;  %1305 = vmatprep.subr.mxu1 %v282_v43  ;;  %v260_v7 = vld [vmem:[%s2240_s1 + $0x728] sm:$0xff]  ;;  %v227_v10 = vld [vmem:[%s2240_s1 + $0x620] sm:$0xff]  ;;  %v226_v15 = vld [vmem:[%s2240_s1 + $0x618] sm:$0xff]  ;;  %v363_v22 = vrot.slane %v349_v12, %v1560_v51  ;;  %v364_v28 = vcombine.high %v356_v19, %v356_v19 }
  0x73   :  { %1271 = vmatpush3.msra.mxu0 %v234_v44  ;;  %1306 = vmatpush3.msra.mxu1 %v266_v45  ;;  %v259_v11 = vld [vmem:[%s2240_s1 + $0x720] sm:$0xff]  ;;  %v258_v16 = vld [vmem:[%s2240_s1 + $0x718] sm:$0xff]  ;;  %v241_v17 = vld [vmem:[%s2240_s1 + $0x690] sm:$0xff] }
  0x74   :  { %1272 = vmatprep.subr.mxu0 %v249_v46  ;;  %1307 = vmatprep.subr.mxu1 %v281_v47  ;;  %v273_v18 = vld [vmem:[%s2240_s1 + $0x790] sm:$0xff]  ;;  %v240_v23 = vld [vmem:[%s2240_s1 + $0x688] sm:$0xff]  ;;  %v239_v26 = vld [vmem:[%s2240_s1 + $0x680] sm:$0xff]  ;;  %v365_v30 = vcombine.high %v363_v22, %v363_v22 }
  0x75   :  { %1273 = vmatpush3.msra.mxu0 %v233_v48  ;;  %1308 = vmatpush3.msra.mxu1 %v265_v49  ;;  %v225_v20 = vld [vmem:[%s2240_s1 + $0x610] sm:$0xff]  ;;  %v272_v24 = vld [vmem:[%s2240_s1 + $0x788] sm:$0xff]  ;;  %v271_v27 = vld [vmem:[%s2240_s1 + $0x780] sm:$0xff] }
  0x76   :  { %1274 = vmatprep.subr.mxu0 %v248_v50  ;;  %1309 = vmatprep.subr.mxu1 %v280_v52  ;;  %v257_v21 = vld [vmem:[%s2240_s1 + $0x710] sm:$0xff]  ;;  %v224_v25 = vld [vmem:[%s2240_s1 + $0x608] sm:$0xff]  ;;  %v223_v29 = vld [vmem:[%s2240_s1 + $0x600] sm:$0xff] }
  0x77   :  { %1275 = vmatpush3.msra.mxu0 %v232_v53  ;;  %1310 = vmatpush3.msra.mxu1 %v264_v54  ;;  %v256_v51 = vld [vmem:[%s2240_s1 + $0x708] sm:$0xff]  ;;  %v255_v31 = vld [vmem:[%s2240_s1 + $0x700] sm:$0xff]  ;;  %v948_v33 = vld [vmem:[%s2243_s4 + $0x18] sm:$0xff] }
  0x78   :  { %1276 = vmatprep.subr.mxu0 %v247_v55  ;;  %1311 = vmatprep.subr.mxu1 %v279_v56  ;;  %v947_v34 = vld [vmem:[%s2243_s4 + $0x10] sm:$0xff]  ;;  %v946_v35 = vld [vmem:[%s2243_s4 + $0x8] sm:$0xff]  ;;  %v945_v36 = vld [vmem:[%s2243_s4] sm:$0xff] }
  0x79   :  { %1277 = vmatpush3.msra.mxu0 %v231_v57  ;;  %1312 = vmatpush3.msra.mxu1 %v263_v58  ;;  %v1049_v42 = vld [vmem:[%s2241_s2] ss:$0 sm:$0xff] }
  0x7a   :  { %1278 = vmatprep.subr.mxu0 %v246_v59  ;;  %1313 = vmatprep.subr.mxu1 %v278_v60  ;;  %v1030_v12 = vld [vmem:[%s2245_s6] sm:$0x3] }
  0x7b   :  { %1279 = vmatpush3.msra.mxu0 %v230_v61  ;;  %1314 = vmatpush3.msra.mxu1 %v262_v62 }
  0x7c   :  { %1280 = vmatprep.subr.mxu0 %v245_v63  ;;  %1315 = vmatprep.subr.mxu1 %v277_v0 }
  0x7d   :  { %1281 = vmatpush3.msra.mxu0 %v229_v1  ;;  %1316 = vmatpush3.msra.mxu1 %v261_v2 }
  0x7e   :  { %1282 = vmatprep.subr.mxu0 %v244_v3  ;;  %1317 = vmatprep.subr.mxu1 %v276_v4 }
  0x7f   :  { %1283 = vmatpush3.msra.mxu0 %v228_v6  ;;  %1318 = vmatpush3.msra.mxu1 %v260_v7  ;;  %v942_v6 = vld [vmem:[%s2242_s3] sm:$0x3]  ;;  %s1356_s3 = scalar_lea.vmem %s1042_s26, 32 }
  0x80   :  { %1284 = vmatprep.subr.mxu0 %v243_v8  ;;  %1319 = vmatprep.subr.mxu1 %v275_v9  ;;  %p1357_p0 = scmp.ne.s32.totalorder %s1042_s26, %s1356_s3  ;;  %p1362_p2 = scmp.lt.s32.totalorder %s1356_s3, %s1356_s3 }
  0x81   :  { %1285 = vmatpush3.msra.mxu0 %v227_v10  ;;  %1320 = vmatpush3.msra.mxu1 %v259_v11  ;;  %v1050_v10 = vld [vmem:[%s2244_s5] ss:$0 sm:$0xff] }
  0x82   :  { %1286 = vmatprep.subr.mxu0 %v242_v13  ;;  %1321 = vmatprep.subr.mxu1 %v274_v14  ;;  %p1363_p3 = por %p1362_p2, %p1361_p1 }
  0x83   :  { %1287 = vmatpush3.msra.mxu0 %v226_v15  ;;  %1322 = vmatpush3.msra.mxu1 %v258_v16 }
  0x84   :  { %1288 = vmatprep.subr.mxu0 %v241_v17  ;;  %1323 = vmatprep.subr.mxu1 %v273_v18  ;;  %p1364_p4 = pnand %p1363_p3, %p1357_p0 }
  0x85   :  { %1289 = vmatpush3.msra.mxu0 %v225_v20  ;;  %1324 = vmatpush3.msra.mxu1 %v257_v21 }
  0x86   :  { %1290 = vmatprep.subr.mxu0 %v240_v23  ;;  %1325 = vmatprep.subr.mxu1 %v272_v24 }
  0x87   :  { %1291 = vmatpush3.msra.mxu0 %v224_v25  ;;  %1326 = vmatpush3.msra.mxu1 %v256_v51 }
  0x88   :  { %1292 = vmatprep.subr.mxu0 %v239_v26  ;;  %1327 = vmatprep.subr.mxu1 %v271_v27 }
  0x89   :  { %1293 = vmatpush3.msra.mxu0 %v223_v29  ;;  %866 = vmatprep.mubr.f32.mxu0 %v364_v28 }
  0x8a   :  { %1328 = vmatpush3.msra.mxu1 %v255_v31  ;;  %936 = vmatprep.mubr.f32.mxu1 %v365_v30 }
  0x8b   :  { %867 = vmatmul.mubr.f32.vlgmr.msra.gmra.mxu0 %v356_v19  ;;  %937 = vmatmul.mubr.f32.vlgmr.msra.gmra.mxu1 %v363_v22 }
  0x8c   :  { %1337 = vmatprep.subr.mxu0 %v1379_v32  ;;  %1345 = vmatprep.mubr.msk.f32.mxu0 %vm1380_vm0, %v1379_v32 }
  0x8d   :  { %1338 = vmatpush3.msra.mxu0 %v948_v33 }
  0x8e   :  { %1339 = vmatprep.subr.mxu0 %v1379_v32 }
  0x8f   :  { %1340 = vmatpush3.msra.mxu0 %v947_v34 }
  0x90   :  { %1341 = vmatprep.subr.mxu0 %v1379_v32 }
  0x91   :  { %1342 = vmatpush3.msra.mxu0 %v946_v35 }
  0x92   :  { %1343 = vmatprep.subr.mxu0 %v1379_v32 }
  0x93   :  { %1344 = vmatpush3.msra.mxu0 %v945_v36 }
  0xe4   :  { %v1084_v37 = vpop.f32.mrf.mxu0 }
  0xe6   :  { %v1119_v38 = vpop.f32.mrf.mxu1  ;;  %v1085_v39 = vpop.f32.mrf.mxu0 }
  0xe7   :  { %v1086_v41 = vadd.f32 %v1085_v39, %v1084_v37 }
  0xe8   :  { %v1120_v43 = vpop.f32.mrf.mxu1 }
  0xe9   :  { %v449_v46 = vadd.f32 %v1086_v41, %v1049_v42  ;;  %v1121_v47 = vadd.f32 %v1120_v43, %v1119_v38 }
  0xeb   :  { %v519_v52 = vadd.f32 %v1121_v47, %v449_v46 }
 0x106   :  { %v1154_v40 = vpop.f32.mrf.mxu0 }
 0x108   :  { %v1189_v44 = vpop.f32.mrf.mxu1  ;;  %v1155_v45 = vpop.f32.mrf.mxu0 }
 0x109   :  { %v1156_v49 = vadd.f32 %v1155_v45, %v1154_v40 }
 0x10a   :  { %v1190_v50 = vpop.f32.mrf.mxu1 }
 0x10b   :  { %v589_v55 = vadd.f32 %v1156_v49, %v519_v52  ;;  %v1191_v56 = vadd.f32 %v1190_v50, %v1189_v44 }
 0x10d   :  { %v659_v59 = vadd.f32 %v1191_v56, %v589_v55 }
 0x128   :  { %v1224_v48 = vpop.f32.mrf.mxu0 }
 0x12a   :  { %v1259_v53 = vpop.f32.mrf.mxu1  ;;  %v1225_v54 = vpop.f32.mrf.mxu0 }
 0x12b   :  { %v1226_v57 = vadd.f32 %v1225_v54, %v1224_v48 }
 0x12c   :  { %v1260_v58 = vpop.f32.mrf.mxu1 }
 0x12d   :  { %v729_v60 = vadd.f32 %v1226_v57, %v659_v59  ;;  %v1261_v61 = vadd.f32 %v1260_v58, %v1259_v53 }
 0x12f   :  { %v799_v2 = vadd.f32 %v1261_v61, %v729_v60 }
 0x14b   :  { %v1294_v62 = vpop.f32.mrf.mxu0  ;;  %v1329_v63 = vpop.f32.mrf.mxu1 }
 0x14d   :  { %v1295_v0 = vpop.f32.mrf.mxu0  ;;  %v1330_v1 = vpop.f32.mrf.mxu1 }
 0x14e   :  { %v1296_v3 = vadd.f32 %v1295_v0, %v1294_v62  ;;  %v1331_v5 = vadd.f32 %v1330_v1, %v1329_v63 }
 0x150   :  { %v869_v4 = vadd.f32 %v1296_v3, %v799_v2 }
 0x152   :  { %v939_v7 = vadd.f32 %v1331_v5, %v869_v4 }
 0x154   :  { %v943_v8 = vmul.f32 %v942_v6, %v939_v7 }
 0x156   :  { %v944_v9 = vmax.f32 %v943_v8, 0.0 }
 0x158   :  { %1346 = vmatmul.mubr.msk.f32.vlgmr.msra.gmra.mxu0 %vm956_vm1, %v944_v9 }
 0x218   :  { %v1026_v11 = vpop.f32.mrf.mxu0 }
 0x219   :  { %v1027_v13 = vadd.f32 %v1050_v10, %v1026_v11 }
 0x21a   :  { %v1347_v14 = vpop.f32.mrf.mxu0 }
 0x21b   :  { %v1031_v15 = vmul.f32 %v1030_v12, %v1027_v13 }
 0x21d   :  { %v1032_v16 = vmax.f32 %v1031_v15, 0.0 }
 0x21f   :  { %v1033_v17 = vsel %vm956_vm1, %v1032_v16, 0.0 }
 0x220   :  { %1034 = vst [vmem:[#allocation2] sm:$0x3] %v1033_v17 }
 0x221   :  { %1367 = shalt.err (!%p1364_p4)
}
 0x222   :  { %1044 = dma.vmem_to_hbm [thread:$0]  %s1042_s26, 32, %s2246_s7, [#allocation3]  }
 0x223   :  { %1376 = dma.done.wait [#allocation3], 32  }
 0x224   :  { %1377 = vsyncadd [#allocation3], 4294967264 }
 0x225   :  { %1048 = vsyncpa [#allocation3], 1 }

// kernel: dropout_fastrcnn_convfc_head.2
= control target key start
LH: loop header
LB: loop body
LE: loop exit
PB: predicated region body
PF: predicated region fallthrough
CT: control target
= control target key end

     0   :  { %v56_v0 = vlaneseq  ;;  %s3697_s25 = smov 17   ;;  %s3698_s9 = smov 1   ;;  %vm45_vm0 = vcmask 138240   ;;  %vm105_vm1 = vcmask 7168   ;;  %vm481_vm2 = vcmask 15360   ;;  %s4504_s0 = inlined_call_operand.vmem [shape: f32[4,512], index: 0, kind: input, shape index: {}]   ;;  %s4505_s1 = inlined_call_operand.vmem [shape: f32[9,512], index: 1, kind: input, shape index: {}]   ;;  %s4506_s3 = inlined_call_operand.vmem [shape: f32[8,1], index: 3, kind: input, shape index: {}]   ;;  %s4507_s2 = inlined_call_operand.vmem [shape: f32[9,8,4], index: 2, kind: input, shape index: {}]   ;;  %s4508_s5 = inlined_call_operand.vmem [shape: f32[8,1], index: 5, kind: input, shape index: {}]   ;;  %s4509_s4 = inlined_call_operand.vmem [shape: f32[9,8,8], index: 4, kind: input, shape index: {}]   ;;  %s4510_s6 = inlined_call_operand.vmem [shape: f32[8,512], index: 6, kind: output, shape index: {}]  }
   0x1   :  { %v24_v1 = vld [vmem:[%s4504_s0 + $0x8] sm:$0xff]  ;;  %v23_v2 = vld [vmem:[%s4504_s0] sm:$0xff]  ;;  %v28_v11 = vld [vmem:[%s4505_s1 + $0x18] sm:$0xff]  ;;  %s3699_s10 = smov 2   ;;  %s3700_s11 = smov 16   ;;  %vm702_vm3 = vcmask 130048  }
   0x2   :  { %41 = vrot.lane.b32.xlu1 %v24_v1, %s3697_s25  ;;  %v36_v3 = vcombine.high %v24_v1, %v24_v1  ;;  %37 = vrot.lane.b32.xlu0 %v23_v2, %s3697_s25  ;;  %v35_v4 = vcombine.high %v23_v2, %v23_v2  ;;  %v57_v5 = vshrl.u32 %v56_v0, 7  ;;  %v3761_v6 = vld [vmem:[%s4505_s1 + $0x8] sm:$0xff]  ;;  %v3766_v7 = vld [vmem:[%s4505_s1] sm:$0xff]  ;;  %s3701_s12 = smov 18   ;;  %s3702_s13 = smov 32   ;;  %vm1099_vm4 = vcmask 146432  }
   0x3   :  { %v27_v12 = vld [vmem:[%s4505_s1 + $0x10] sm:$0xff]  ;;  %s3703_s14 = smov 33   ;;  %v3640_v45 = vld [vmem:[%s4505_s1 + $0x28] ss:$0 sm:$0xff]  ;;  %v3639_v46 = vld [vmem:[%s4505_s1 + $0x20] ss:$0 sm:$0xff] }
   0x4   :  { %v79_v8 = vsub.s32 1, %v57_v5  ;;  %v455_v15 = vsub.s32 2, %v57_v5  ;;  %v58_v16 = vsub.s32 0, %v57_v5  ;;  %v676_v25 = vsub.s32 3, %v57_v5  ;;  %s3704_s19 = smov 34   ;;  %s3705_s24 = smov 111  }
   0x5   :  { %v1073_v30 = vsub.s32 5, %v57_v5  ;;  %v1294_v35 = vsub.s32 6, %v57_v5  ;;  %v1515_v40 = vsub.s32 7, %v57_v5  ;;  %v3642_v47 = vld [vmem:[%s4505_s1 + $0x38] ss:$0 sm:$0xff]  ;;  %s3707_s26 = smov 126  }
   0x6   :  { %43 = vrot.lane.b32.xlu1 %v36_v3, %s3697_s25  ;;  %39 = vrot.lane.b32.xlu0 %v35_v4, %s3697_s25  ;;  %v84_v9 = vrot.slane %v3761_v6, %v79_v8  ;;  %v80_v10 = vrot.slane %v3766_v7, %v79_v8  ;;  %v92_v13 = vrot.slane %v28_v11, %v79_v8  ;;  %v3641_v48 = vld [vmem:[%s4505_s1 + $0x30] ss:$0 sm:$0xff]  ;;  %s3706_s1 = smov 127   ;;  %s3708_s27 = smov 112   ;;  %vm1320_vm5 = vcmask 261120  }
   0x7   :  { %v88_v14 = vrot.slane %v27_v12, %v79_v8  ;;  %v3779_v17 = vrot.slane %v3761_v6, %v58_v16  ;;  %v3782_v18 = vrot.slane %v3766_v7, %v58_v16  ;;  %v3784_v19 = vrot.slane %v28_v11, %v58_v16  ;;  %s3709_s28 = smov 110   ;;  %s3711_s29 = smov 96  }
   0x8   :  { %v3786_v20 = vrot.slane %v27_v12, %v58_v16  ;;  %v460_v21 = vrot.slane %v3761_v6, %v455_v15  ;;  %v456_v22 = vrot.slane %v3766_v7, %v455_v15  ;;  %v468_v23 = vrot.slane %v28_v11, %v455_v15  ;;  %s3712_s0 = smov 95   ;;  %s3713_s30 = smov 94  }
   0x9   :  { %4528 = vst [vmem:[#allocation2_spill] sm:$0xff] %v3779_v17  ;;  %4529 = vst [vmem:[#allocation3_spill] sm:$0xff] %v3782_v18  ;;  %v464_v24 = vrot.slane %v27_v12, %v455_v15  ;;  %v681_v26 = vrot.slane %v3761_v6, %v676_v25  ;;  %v677_v27 = vrot.slane %v3766_v7, %v676_v25  ;;  %vm1541_vm6 = vcmask 269312  }
   0xa   :  { %99 = vrot.lane.b32.xlu1 %v84_v9, %s3698_s9  ;;  %97 = vrot.lane.b32.xlu0 %v80_v10, %s3698_s9  ;;  %4530 = vst [vmem:[#allocation4_spill] sm:$0xff] %v3784_v19  ;;  %4531 = vst [vmem:[#allocation5_spill] sm:$0xff] %v3786_v20  ;;  %v689_v28 = vrot.slane %v28_v11, %v676_v25  ;;  %v685_v29 = vrot.slane %v27_v12, %v676_v25  ;;  %vm1762_vm7 = vcmask 277504   ;;  %vm136_vm8 = vcmask 1039360  }
   0xb   :  { %v1078_v31 = vrot.slane %v3761_v6, %v1073_v30  ;;  %v1074_v32 = vrot.slane %v3766_v7, %v1073_v30  ;;  %v1086_v33 = vrot.slane %v28_v11, %v1073_v30  ;;  %v1082_v34 = vrot.slane %v27_v12, %v1073_v30 }
   0xc   :  { %v1299_v36 = vrot.slane %v3761_v6, %v1294_v35  ;;  %v1295_v37 = vrot.slane %v3766_v7, %v1294_v35  ;;  %v1307_v38 = vrot.slane %v28_v11, %v1294_v35  ;;  %v1303_v39 = vrot.slane %v27_v12, %v1294_v35 }
   0xd   :  { %v1520_v41 = vrot.slane %v3761_v6, %v1515_v40  ;;  %v1516_v42 = vrot.slane %v3766_v7, %v1515_v40  ;;  %v1528_v43 = vrot.slane %v28_v11, %v1515_v40  ;;  %v1524_v44 = vrot.slane %v27_v12, %v1515_v40 }
   0xe   :  { %103 = vrot.lane.b32.xlu1 %v92_v13, %s3698_s9  ;;  %101 = vrot.lane.b32.xlu0 %v88_v14, %s3698_s9  ;;  %vm145_vm9 = vcmask 1043456   ;;  %vm141_vm10 = vcmask 31744   ;;  %vm512_vm11 = vcmask 1031168   ;;  %vm733_vm12 = vcmask 916480  }
   0xf   :  { %vm909_vm13 = vcmask 908288   ;;  %vm1130_vm14 = vcmask 900096   ;;  %vm1351_vm15 = vcmask 785408  }
  0x12   :  { %475 = vrot.lane.b32.xlu1 %v460_v21, %s3699_s10  ;;  %473 = vrot.lane.b32.xlu0 %v456_v22, %s3699_s10 }
  0x16   :  { %479 = vrot.lane.b32.xlu1 %v468_v23, %s3699_s10  ;;  %477 = vrot.lane.b32.xlu0 %v464_v24, %s3699_s10  ;;  %v4511_v24 = vmov 0.0  }
  0x17   :  { %218 = vmatprep.mubr.f32.mxu0 %v4511_v24  ;;  %289 = vmatprep.mubr.f32.mxu1 %v4511_v24  ;;  %v3584_v24 = vld [vmem:[%s4507_s2 + $0x8] sm:$0xff] }
  0x1a   :  { %696 = vrot.lane.b32.xlu1 %v681_v26, %s3700_s11  ;;  %694 = vrot.lane.b32.xlu0 %v677_v27, %s3700_s11 }
  0x1e   :  { %700 = vrot.lane.b32.xlu1 %v689_v28, %s3700_s11  ;;  %698 = vrot.lane.b32.xlu0 %v685_v29, %s3700_s11 }
  0x22   :  { %1093 = vrot.lane.b32.xlu1 %v1078_v31, %s3701_s12  ;;  %1091 = vrot.lane.b32.xlu0 %v1074_v32, %s3701_s12 }
  0x26   :  { %1097 = vrot.lane.b32.xlu1 %v1086_v33, %s3701_s12  ;;  %1095 = vrot.lane.b32.xlu0 %v1082_v34, %s3701_s12 }
  0x2a   :  { %1314 = vrot.lane.b32.xlu1 %v1299_v36, %s3702_s13  ;;  %1312 = vrot.lane.b32.xlu0 %v1295_v37, %s3702_s13 }
  0x2e   :  { %1318 = vrot.lane.b32.xlu1 %v1307_v38, %s3702_s13  ;;  %1316 = vrot.lane.b32.xlu0 %v1303_v39, %s3702_s13 }
  0x32   :  { %1535 = vrot.lane.b32.xlu1 %v1520_v41, %s3703_s14  ;;  %1533 = vrot.lane.b32.xlu0 %v1516_v42, %s3703_s14 }
  0x36   :  { %1539 = vrot.lane.b32.xlu1 %v1528_v43, %s3703_s14  ;;  %1537 = vrot.lane.b32.xlu0 %v1524_v44, %s3703_s14 }
  0x3a   :  { %1756 = vrot.lane.b32.xlu1 %v3640_v45, %s3704_s19  ;;  %1754 = vrot.lane.b32.xlu0 %v3639_v46, %s3704_s19 }
  0x3e   :  { %1760 = vrot.lane.b32.xlu1 %v3642_v47, %s3704_s19  ;;  %1758 = vrot.lane.b32.xlu0 %v3641_v48, %s3704_s19 }
  0x74   :  { %v42_v49 = vpop.permute.xlu1 %41  ;;  %v38_v50 = vpop.permute.xlu0 %37 }
  0x75   :  { %v3811_v51 = vsel %vm45_vm0, 0.0, %v38_v50 }
  0x76   :  { %899 = vrot.lane.b32.xlu1 %v3811_v51, %s3705_s24 }
  0x78   :  { %v44_v52 = vpop.permute.xlu1 %43  ;;  %v40_v53 = vpop.permute.xlu0 %39 }
  0x79   :  { %v3816_v54 = vsel %vm45_vm0, %v38_v50, %v40_v53  ;;  %v3819_v55 = vsel %vm45_vm0, %v40_v53, %v42_v49  ;;  %v3828_v58 = vsel %vm45_vm0, %v42_v49, %v44_v52  ;;  %v3831_v59 = vsel %vm45_vm0, %v44_v52, 0.0 }
  0x7a   :  { %903 = vrot.lane.b32.xlu0 %v3819_v55, %s3705_s24  ;;  %901 = vrot.lane.b32.xlu1 %v3816_v54, %s3705_s24 }
  0x7c   :  { %v100_v56 = vpop.permute.xlu1 %99  ;;  %v3825_v57 = vpop.permute.xlu0 %97 }
  0x7d   :  { %v114_v62 = vmul.f32 %v3825_v57, %v3811_v51  ;;  %v3895_v30 = vsel %vm105_vm1, %v3825_v57, %v100_v56 }
  0x7e   :  { %907 = vrot.lane.b32.xlu0 %v3831_v59, %s3705_s24  ;;  %905 = vrot.lane.b32.xlu1 %v3828_v58, %s3705_s24  ;;  %v115_v32 = vmul.f32 %v3895_v30, %v3816_v54 }
  0x80   :  { %v3837_v60 = vpop.permute.xlu1 %103  ;;  %v102_v61 = vpop.permute.xlu0 %101 }
  0x81   :  { %v118_v63 = vmul.f32 %v3837_v60, %v3831_v59  ;;  %v3885_v26 = vsel %vm105_vm1, %v100_v56, %v102_v61  ;;  %v3908_v34 = vsel %vm105_vm1, %v102_v61, %v3837_v60  ;;  %vm1572_vm1 = vcmask 777216  }
  0x82   :  { %126 = vrot.lane.b32.xlu0 %v114_v62, %s3706_s1  ;;  %v116_v29 = vmul.f32 %v3885_v26, %v3819_v55  ;;  %v117_v36 = vmul.f32 %v3908_v34, %v3828_v58 }
  0x83   :  { %134 = vrot.lane.b32.xlu1 %v118_v63, %s3706_s1 }
  0x84   :  { %v476_v0 = vpop.permute.xlu1 %475  ;;  %v3845_v1 = vpop.permute.xlu0 %473 }
  0x85   :  { %v490_v2 = vmul.f32 %v3845_v1, %v3811_v51  ;;  %v3899_v31 = vsel %vm481_vm2, %v3845_v1, %v476_v0 }
  0x86   :  { %v491_v33 = vmul.f32 %v3899_v31, %v3816_v54 }
  0x87   :  { %502 = vrot.lane.b32.xlu1 %v490_v2, %s3707_s26 }
  0x88   :  { %v3850_v3 = vpop.permute.xlu1 %479  ;;  %v478_v4 = vpop.permute.xlu0 %477 }
  0x89   :  { %v494_v5 = vmul.f32 %v3850_v3, %v3831_v59  ;;  %v3912_v35 = vsel %vm481_vm2, %v478_v4, %v3850_v3  ;;  %v3921_v38 = vsel %vm481_vm2, %v476_v0, %v478_v4  ;;  %vm1793_vm2 = vcmask 769024  }
  0x8a   :  { %v493_v37 = vmul.f32 %v3912_v35, %v3828_v58  ;;  %v492_v41 = vmul.f32 %v3921_v38, %v3819_v55 }
  0x8b   :  { %510 = vrot.lane.b32.xlu0 %v494_v5, %s3707_s26 }
  0x8c   :  { %v697_v6 = vpop.permute.xlu1 %696  ;;  %v3855_v7 = vpop.permute.xlu0 %694 }
  0x8d   :  { %v711_v8 = vmul.f32 %v3855_v7, %v3811_v51  ;;  %v3938_v44 = vsel %vm702_vm3, %v3855_v7, %v697_v6 }
  0x8e   :  { %v712_v47 = vmul.f32 %v3938_v44, %v3816_v54 }
  0x8f   :  { %723 = vrot.lane.b32.xlu0 %v711_v8, %s3708_s27 }
  0x90   :  { %v3860_v9 = vpop.permute.xlu1 %700  ;;  %v699_v10 = vpop.permute.xlu0 %698 }
  0x91   :  { %v715_v11 = vmul.f32 %v3860_v9, %v3831_v59  ;;  %v3924_v39 = vsel %vm702_vm3, %v697_v6, %v699_v10  ;;  %v3950_v49 = vsel %vm702_vm3, %v699_v10, %v3860_v9 }
  0x92   :  { %v713_v42 = vmul.f32 %v3924_v39, %v3819_v55  ;;  %v714_v52 = vmul.f32 %v3950_v49, %v3828_v58 }
  0x93   :  { %731 = vrot.lane.b32.xlu1 %v715_v11, %s3708_s27 }
  0x94   :  { %v1094_v12 = vpop.permute.xlu1 %1093  ;;  %v3865_v13 = vpop.permute.xlu0 %1091 }
  0x95   :  { %v1108_v14 = vmul.f32 %v3865_v13, %v3811_v51  ;;  %v3969_v61 = vsel %vm1099_vm4, %v3865_v13, %v1094_v12 }
  0x96   :  { %v1109_v2 = vmul.f32 %v3969_v61, %v3816_v54 }
  0x97   :  { %1120 = vrot.lane.b32.xlu0 %v1108_v14, %s3709_s28 }
  0x98   :  { %v3870_v15 = vpop.permute.xlu1 %1097  ;;  %v3872_v16 = vpop.permute.xlu0 %1095 }
  0x99   :  { %v1112_v21 = vmul.f32 %v3870_v15, %v3831_v59  ;;  %v3934_v43 = vsel %vm1099_vm4, %v1094_v12, %v3872_v16  ;;  %v3982_v4 = vsel %vm1099_vm4, %v3872_v16, %v3870_v15 }
  0x9a   :  { %v1110_v48 = vmul.f32 %v3934_v43, %v3819_v55  ;;  %v1111_v11 = vmul.f32 %v3982_v4, %v3828_v58 }
  0x9b   :  { %1128 = vrot.lane.b32.xlu1 %v1112_v21, %s3709_s28 }
  0x9c   :  { %v3877_v22 = vpop.permute.xlu1 %1314  ;;  %v3879_v23 = vpop.permute.xlu0 %1312 }
  0x9d   :  { %v1329_v25 = vmul.f32 %v3879_v23, %v3811_v51  ;;  %v3955_v50 = vsel %vm1320_vm5, %v3879_v23, %v3877_v22 }
  0x9e   :  { %v1330_v53 = vmul.f32 %v3955_v50, %v3816_v54 }
  0x9f   :  { %1341 = vrot.lane.b32.xlu1 %v1329_v25, %s3711_s29 }
  0xa0   :  { %v3888_v27 = vpop.permute.xlu1 %1318  ;;  %v1317_v40 = vpop.permute.xlu0 %1316 }
  0xa1   :  { %4532 = vst [vmem:[#allocation6_spill] sm:$0xff] %v3888_v27  ;;  %v1333_v28 = vmul.f32 %v3888_v27, %v3831_v59  ;;  %v3965_v56 = vsel %vm1320_vm5, %v1317_v40, %v3888_v27  ;;  %v3997_v12 = vsel %vm1320_vm5, %v3877_v22, %v1317_v40 }
  0xa2   :  { %v1332_v0 = vmul.f32 %v3965_v56, %v3828_v58  ;;  %v1331_v14 = vmul.f32 %v3997_v12, %v3819_v55 }
  0xa3   :  { %1349 = vrot.lane.b32.xlu0 %v1333_v28, %s3711_s29  ;;  %130 = vrot.lane.b32.xlu1 %v116_v29, %s3706_s1 }
  0xa4   :  { %v1536_v45 = vpop.permute.xlu1 %1535  ;;  %v3942_v46 = vpop.permute.xlu0 %1533 }
  0xa5   :  { %v4007_v21 = vsel %vm1541_vm6, %v3942_v46, %v1536_v45 }
  0xa6   :  { %4536 = vst [vmem:[#allocation10_spill] sm:$0xff] %v4007_v21  ;;  %v1551_v29 = vmul.f32 %v4007_v21, %v3816_v54 }
  0xa7   :  { %128 = vrot.lane.b32.xlu0 %v115_v32, %s3706_s1  ;;  %504 = vrot.lane.b32.xlu1 %v491_v33, %s3707_s26 }
  0xa8   :  { %v3971_v62 = vpop.permute.xlu1 %1539  ;;  %v1538_v63 = vpop.permute.xlu0 %1537 }
  0xa9   :  { %4533 = vst [vmem:[#allocation7_spill] sm:$0xff] %v3971_v62  ;;  %v3985_v5 = vsel %vm1541_vm6, %v1536_v45, %v1538_v63  ;;  %v1554_v16 = vmul.f32 %v3971_v62, %v3831_v59  ;;  %v4023_v33 = vsel %vm1541_vm6, %v1538_v63, %v3971_v62 }
  0xaa   :  { %4534 = vst [vmem:[#allocation8_spill] sm:$0xff] %v3985_v5  ;;  %v1552_v6 = vmul.f32 %v3985_v5, %v3819_v55  ;;  %4539 = vst [vmem:[#allocation13_spill] sm:$0xff] %v4023_v33 }
  0xab   :  { %132 = vrot.lane.b32.xlu0 %v117_v36, %s3706_s1  ;;  %508 = vrot.lane.b32.xlu1 %v493_v37, %s3707_s26  ;;  %v1553_v37 = vmul.f32 %v4023_v33, %v3828_v58 }
  0xac   :  { %v1757_v8 = vpop.permute.xlu1 %1756  ;;  %v3991_v10 = vpop.permute.xlu0 %1754 }
  0xad   :  { %4535 = vst [vmem:[#allocation9_spill] sm:$0xff] %v3991_v10  ;;  %v4011_v22 = vsel %vm1762_vm7, %v3991_v10, %v1757_v8 }
  0xae   :  { %4537 = vst [vmem:[#allocation11_spill] sm:$0xff] %v4011_v22  ;;  %v1772_v32 = vmul.f32 %v4011_v22, %v3816_v54 }
  0xaf   :  { %506 = vrot.lane.b32.xlu0 %v492_v41, %s3707_s26  ;;  %727 = vrot.lane.b32.xlu1 %v713_v42, %s3708_s27  ;;  %v1550_v41 = vmul.f32 %v3942_v46, %v3811_v51  ;;  %v1771_v42 = vmul.f32 %v3991_v10, %v3811_v51  ;;  %v72_v10 = vmul.f32 %v3782_v18, %v3811_v51 }
  0xb0   :  { %v4013_v25 = vpop.permute.xlu1 %1760  ;;  %v1759_v28 = vpop.permute.xlu0 %1758  ;;  %v75_v51 = vmul.f32 %v3784_v19, %v3828_v58 }
  0xb1   :  { %4538 = vst [vmem:[#allocation12_spill] sm:$0xff] %v4013_v25  ;;  %v4027_v36 = vsel %vm1762_vm7, %v1759_v28, %v4013_v25  ;;  %v4042_v45 = vsel %vm1762_vm7, %v1757_v8, %v1759_v28 }
  0xb2   :  { %4540 = vst [vmem:[#allocation14_spill] sm:$0xff] %v4027_v36  ;;  %v1774_v40 = vmul.f32 %v4027_v36, %v3828_v58  ;;  %4541 = vst [vmem:[#allocation15_spill] sm:$0xff] %v4042_v45  ;;  %v4542_v36 = vmov 0.0   ;;  %v3597_v58 = vld [vmem:[%s4507_s2 + $0x10] sm:$0xff] }
  0xb3   :  { %725 = vrot.lane.b32.xlu0 %v712_v47, %s3708_s27  ;;  %1124 = vrot.lane.b32.xlu1 %v1110_v48, %s3709_s28  ;;  %v3714_v47 = vmov 0   ;;  %v1773_v48 = vmul.f32 %v4042_v45, %v3819_v55 }
  0xb4   :  { %3694 = vset.pattern.permute.xlu0 %v3714_v47 }
  0xb7   :  { %729 = vrot.lane.b32.xlu0 %v714_v52, %s3708_s27  ;;  %1343 = vrot.lane.b32.xlu1 %v1330_v53, %s3711_s29  ;;  %v1775_v52 = vmul.f32 %v4013_v25, %v3831_v59  ;;  %v1955_v53 = vld [vmem:[%s4506_s3] sm:$0xff]  ;;  %v73_v25 = vmul.f32 %v3779_v17, %v3816_v54 }
  0xb8   :  { %v76_v54 = vld [vmem:[%s4507_s2] sm:$0xff] }
  0xbb   :  { %1122 = vrot.lane.b32.xlu0 %v1109_v2, %s3709_s28  ;;  %1347 = vrot.lane.b32.xlu1 %v1332_v0, %s3711_s29 }
  0xbf   :  { %1126 = vrot.lane.b32.xlu0 %v1111_v11, %s3709_s28  ;;  %1566 = vrot.lane.b32.xlu1 %v1552_v6, %s3712_s0 }
  0xc3   :  { %1345 = vrot.lane.b32.xlu0 %v1331_v14, %s3711_s29  ;;  %1570 = vrot.lane.b32.xlu1 %v1554_v16, %s3712_s0 }
  0xc7   :  { %1564 = vrot.lane.b32.xlu0 %v1551_v29, %s3712_s0  ;;  %1785 = vrot.lane.b32.xlu1 %v1772_v32, %s3713_s30 }
  0xcb   :  { %1568 = vrot.lane.b32.xlu0 %v1553_v37, %s3712_s0  ;;  %1789 = vrot.lane.b32.xlu1 %v1774_v40, %s3713_s30 }
  0xcf   :  { %1562 = vrot.lane.b32.xlu0 %v1550_v41, %s3712_s0  ;;  %1783 = vrot.lane.b32.xlu1 %v1771_v42, %s3713_s30 }
  0xd3   :  { %1787 = vrot.lane.b32.xlu0 %v1773_v48, %s3713_s30 }
  0xd7   :  { %1791 = vrot.lane.b32.xlu0 %v1775_v52, %s3713_s30 }
  0xdb   :  { %1958 = vperm.xlu0 %3694, %v1955_v53  }
  0xe8   :  { %v4055_v63 = vpop.permute.xlu1 %899 }
  0xec   :  { %v4057_v0 = vpop.permute.xlu1 %901  ;;  %v4059_v2 = vpop.permute.xlu0 %903 }
  0xf0   :  { %v4061_v6 = vpop.permute.xlu1 %905  ;;  %v4063_v8 = vpop.permute.xlu0 %907 }
  0xf4   :  { %v127_v14 = vpop.permute.xlu0 %126 }
  0xf5   :  { %v135_v11 = vpop.permute.xlu1 %134 }
  0xf9   :  { %v503_v59 = vpop.permute.xlu1 %502 }
  0xfd   :  { %v511_v16 = vpop.permute.xlu0 %510 }
 0x101   :  { %v724_v29 = vpop.permute.xlu0 %723 }
 0x105   :  { %v4065_v28 = vpop.permute.xlu1 %731 }
 0x109   :  { %v4069_v37 = vpop.permute.xlu0 %1120 }
 0x10d   :  { %v4067_v32 = vpop.permute.xlu1 %1128 }
 0x111   :  { %v4071_v40 = vpop.permute.xlu1 %1341 }
 0x115   :  { %v131_v41 = vpop.permute.xlu1 %130  ;;  %v4073_v42 = vpop.permute.xlu0 %1349 }
 0x119   :  { %v505_v47 = vpop.permute.xlu1 %504  ;;  %v129_v48 = vpop.permute.xlu0 %128 }
 0x11a   :  { %v138_v52 = vsel %vm136_vm8, %v129_v48, %v131_v41  ;;  %v137_v53 = vsel %vm136_vm8, %v127_v14, %v129_v48 }
 0x11b   :  { %3585 = vmatprep.subr.msk.mxu0 %vm145_vm9, %v138_v52 }
 0x11c   :  { %3586 = vmatpush1.msk.msra.mxu0 %vm145_vm9, %v137_v53  ;;  %v513_v53 = vsel %vm512_vm11, %v503_v59, %v505_v47 }
 0x11d   :  { %v509_v45 = vpop.permute.xlu1 %508  ;;  %3587 = vmatmul.mubr.msk.f32.vlgmr.msra.gmra.mxu0 %vm141_vm10, %v3584_v24  ;;  %3591 = vmatprep.subr.msk.mxu0 %vm145_vm9, %v73_v25  ;;  %v133_v14 = vpop.permute.xlu0 %132 }
 0x11e   :  { %3592 = vmatpush1.msk.msra.mxu0 %vm145_vm9, %v72_v10  ;;  %v140_v48 = vsel %vm136_vm8, %v133_v14, %v135_v11  ;;  %v139_v52 = vsel %vm136_vm8, %v131_v41, %v133_v14  ;;  %375 = vmatprep.mubr.f32.mxu0 %v4542_v36  ;;  %v74_v11 = vmul.f32 %v3786_v20, %v3819_v55 }
 0x11f   :  { %3588 = vmatprep.subr.msk.mxu1 %vm145_vm9, %v140_v48  ;;  %v516_v14 = vsel %vm512_vm11, %v509_v45, %v511_v16  ;;  %v911_v48 = vsel %vm909_vm13, %v4057_v0, %v4059_v2 }
 0x120   :  { %3589 = vmatpush1.msk.msra.mxu1 %vm145_vm9, %v139_v52 }
 0x121   :  { %v728_v25 = vpop.permute.xlu1 %727  ;;  %3590 = vmatmul.mubr.msk.f32.vlgmr.msra.gmra.mxu1 %vm141_vm10, %v3584_v24  ;;  %3593 = vmatmul.mubr.msk.f32.vlgmr.msra.gmra.mxu0 %vm141_vm10, %v76_v54  ;;  %v507_v10 = vpop.permute.xlu0 %506 }
 0x122   :  { %3594 = vmatprep.subr.msk.mxu1 %vm145_vm9, %v75_v51  ;;  %v514_v41 = vsel %vm512_vm11, %v505_v47, %v507_v10  ;;  %446 = vmatprep.mubr.f32.mxu1 %v4542_v36  ;;  %v515_v55 = vsel %vm512_vm11, %v507_v10, %v509_v45  ;;  %v3604_v45 = vld [vmem:[%s4507_s2 + $0x18] sm:$0xff] }
 0x123   :  { %3595 = vmatpush1.msk.msra.mxu1 %vm145_vm9, %v74_v11  ;;  %3598 = vmatprep.subr.msk.mxu0 %vm145_vm9, %v514_v41  ;;  %v3611_v11 = vld [vmem:[%s4507_s2 + $0x20] sm:$0xff] }
 0x124   :  { %3601 = vmatprep.subr.msk.mxu1 %vm145_vm9, %v516_v14  ;;  %3599 = vmatpush1.msk.msra.mxu0 %vm145_vm9, %v513_v53 }
 0x125   :  { %592 = vmatprep.mubr.f32.mxu0 %v4542_v36  ;;  %v1125_v24 = vpop.permute.xlu1 %1124  ;;  %3596 = vmatmul.mubr.msk.f32.vlgmr.msra.gmra.mxu1 %vm141_vm10, %v76_v54  ;;  %v726_v59 = vpop.permute.xlu0 %725  ;;  %v910_v54 = vsel %vm909_vm13, %v4055_v63, %v4057_v0  ;;  %v913_v63 = vsel %vm909_vm13, %v4061_v6, %v4063_v8  ;;  %v912_v0 = vsel %vm909_vm13, %v4059_v2, %v4061_v6  ;;  %v3618_v2 = vld [vmem:[%s4507_s2 + $0x28] sm:$0xff] }
 0x126   :  { %3600 = vmatmul.mubr.msk.f32.vlgmr.msra.gmra.mxu0 %vm141_vm10, %v3597_v58  ;;  %3602 = vmatpush1.msk.msra.mxu1 %vm145_vm9, %v515_v55  ;;  %v734_v16 = vsel %vm733_vm12, %v724_v29, %v726_v59  ;;  %v735_v47 = vsel %vm733_vm12, %v726_v59, %v728_v25 }
 0x127   :  { %3605 = vmatprep.subr.msk.mxu0 %vm145_vm9, %v735_v47  ;;  %813 = vmatprep.mubr.f32.mxu0 %v4542_v36 }
 0x128   :  { %3606 = vmatpush1.msk.msra.mxu0 %vm145_vm9, %v734_v16  ;;  %663 = vmatprep.mubr.f32.mxu1 %v4542_v36  ;;  %v3625_v16 = vld [vmem:[%s4507_s2 + $0x30] sm:$0xff] }
 0x129   :  { %v1344_v52 = vpop.permute.xlu1 %1343  ;;  %3612 = vmatprep.subr.msk.mxu0 %vm145_vm9, %v911_v48  ;;  %v730_v29 = vpop.permute.xlu0 %729  ;;  %3603 = vmatmul.mubr.msk.f32.vlgmr.msra.gmra.mxu1 %vm141_vm10, %v3597_v58 }
 0x12a   :  { %3607 = vmatmul.mubr.msk.f32.vlgmr.msra.gmra.mxu0 %vm141_vm10, %v3604_v45  ;;  %v736_v51 = vsel %vm733_vm12, %v728_v25, %v730_v29  ;;  %v737_v10 = vsel %vm733_vm12, %v730_v29, %v4065_v28  ;;  %884 = vmatprep.mubr.f32.mxu1 %v4542_v36 }
 0x12b   :  { %3613 = vmatpush1.msk.msra.mxu0 %vm145_vm9, %v910_v54  ;;  %3608 = vmatprep.subr.msk.mxu1 %vm145_vm9, %v737_v10 }
 0x12c   :  { %3609 = vmatpush1.msk.msra.mxu1 %vm145_vm9, %v736_v51  ;;  %989 = vmatprep.mubr.f32.mxu0 %v4542_v36  ;;  %v3632_v51 = vld [vmem:[%s4507_s2 + $0x38] sm:$0xff] }
 0x12d   :  { %v1348_v28 = vpop.permute.xlu1 %1347  ;;  %3615 = vmatprep.subr.msk.mxu1 %vm145_vm9, %v913_v63  ;;  %v1123_v25 = vpop.permute.xlu0 %1122  ;;  %3610 = vmatmul.mubr.msk.f32.vlgmr.msra.gmra.mxu1 %vm141_vm10, %v3604_v45 }
 0x12e   :  { %3614 = vmatmul.mubr.msk.f32.vlgmr.msra.gmra.mxu0 %vm141_vm10, %v3611_v11  ;;  %v1131_v41 = vsel %vm1130_vm14, %v4069_v37, %v1123_v25  ;;  %v1132_v8 = vsel %vm1130_vm14, %v1123_v25, %v1125_v24  ;;  %3616 = vmatpush1.msk.msra.mxu1 %vm145_vm9, %v912_v0  ;;  %v1355_v58 = vsel %vm1351_vm15, %v1348_v28, %v4073_v42  ;;  %v3643_v25 = vld [vmem:[%s4507_s2 + $0x40] sm:$0xff] }
 0x12f   :  { %3619 = vmatprep.subr.msk.mxu0 %vm145_vm9, %v1132_v8  ;;  %1210 = vmatprep.mubr.f32.mxu0 %v4542_v36  ;;  %v1352_v42 = vsel %vm1351_vm15, %v4071_v40, %v1344_v52 }
 0x130   :  { %3620 = vmatpush1.msk.msra.mxu0 %vm145_vm9, %v1131_v41  ;;  %1060 = vmatprep.mubr.f32.mxu1 %v4542_v36 }
 0x131   :  { %v1567_v6 = vpop.permute.xlu1 %1566  ;;  %v1127_v53 = vpop.permute.xlu0 %1126  ;;  %3617 = vmatmul.mubr.msk.f32.vlgmr.msra.gmra.mxu1 %vm141_vm10, %v3611_v11 }
 0x132   :  { %3621 = vmatmul.mubr.msk.f32.vlgmr.msra.gmra.mxu0 %vm141_vm10, %v3618_v2  ;;  %v1133_v37 = vsel %vm1130_vm14, %v1125_v24, %v1127_v53  ;;  %v1134_v14 = vsel %vm1130_vm14, %v1127_v53, %v4067_v32  ;;  %1281 = vmatprep.mubr.f32.mxu1 %v4542_v36 }
 0x133   :  { %3622 = vmatprep.subr.msk.mxu1 %vm145_vm9, %v1134_v14  ;;  %1431 = vmatprep.mubr.f32.mxu0 %v4542_v36 }
 0x134   :  { %3623 = vmatpush1.msk.msra.mxu1 %vm145_vm9, %v1133_v37 }
 0x135   :  { %v1571_v55 = vpop.permute.xlu1 %1570  ;;  %3629 = vmatprep.subr.msk.mxu1 %vm145_vm9, %v1355_v58  ;;  %v1346_v59 = vpop.permute.xlu0 %1345  ;;  %3624 = vmatmul.mubr.msk.f32.vlgmr.msra.gmra.mxu1 %vm141_vm10, %v3618_v2 }
 0x136   :  { %v1353_v32 = vsel %vm1351_vm15, %v1344_v52, %v1346_v59  ;;  %v1354_v24 = vsel %vm1351_vm15, %v1346_v59, %v1348_v28  ;;  %1502 = vmatprep.mubr.f32.mxu1 %v4542_v36 }
 0x137   :  { %3626 = vmatprep.subr.msk.mxu0 %vm145_vm9, %v1353_v32  ;;  %3630 = vmatpush1.msk.msra.mxu1 %vm145_vm9, %v1354_v24 }
 0x138   :  { %3627 = vmatpush1.msk.msra.mxu0 %vm145_vm9, %v1352_v42 }
 0x139   :  { %v1786_v47 = vpop.permute.xlu1 %1785  ;;  %3628 = vmatmul.mubr.msk.f32.vlgmr.msra.gmra.mxu0 %vm141_vm10, %v3625_v16  ;;  %v1565_v45 = vpop.permute.xlu0 %1564  ;;  %3631 = vmatmul.mubr.msk.f32.vlgmr.msra.gmra.mxu1 %vm141_vm10, %v3625_v16 }
 0x13a   :  { %v1574_v48 = vsel %vm1572_vm1, %v1565_v45, %v1567_v6  ;;  %1723 = vmatprep.mubr.f32.mxu1 %v4542_v36  ;;  %1652 = vmatprep.mubr.f32.mxu0 %v4542_v36 }
 0x13b   :  { %3633 = vmatprep.subr.msk.mxu0 %vm145_vm9, %v1574_v48 }
 0x13d   :  { %v1569_v40 = vpop.permute.xlu0 %1568  ;;  %v1790_v52 = vpop.permute.xlu1 %1789 }
 0x13e   :  { %v1575_v29 = vsel %vm1572_vm1, %v1567_v6, %v1569_v40  ;;  %v1576_v54 = vsel %vm1572_vm1, %v1569_v40, %v1571_v55 }
 0x13f   :  { %3636 = vmatprep.subr.msk.mxu1 %vm145_vm9, %v1576_v54 }
 0x140   :  { %3637 = vmatpush1.msk.msra.mxu1 %vm145_vm9, %v1575_v29 }
 0x141   :  { %3638 = vmatmul.mubr.msk.f32.vlgmr.msra.gmra.mxu1 %vm141_vm10, %v3632_v51  ;;  %v1563_v10 = vpop.permute.xlu0 %1562  ;;  %v1784_v63 = vpop.permute.xlu1 %1783 }
 0x142   :  { %v1573_v11 = vsel %vm1572_vm1, %v1563_v10, %v1565_v45  ;;  %1944 = vmatprep.mubr.f32.mxu1 %v4542_v36  ;;  %v1794_v41 = vsel %vm1793_vm2, %v1784_v63, %v1786_v47 }
 0x143   :  { %3634 = vmatpush1.msk.msra.mxu0 %vm145_vm9, %v1573_v11 }
 0x144   :  { %3635 = vmatmul.mubr.msk.f32.vlgmr.msra.gmra.mxu0 %vm141_vm10, %v3632_v51 }
 0x145   :  { %v1788_v0 = vpop.permute.xlu0 %1787  ;;  %1873 = vmatprep.mubr.f32.mxu0 %v4542_v36 }
 0x146   :  { %v1795_v28 = vsel %vm1793_vm2, %v1786_v47, %v1788_v0  ;;  %v1796_v6 = vsel %vm1793_vm2, %v1788_v0, %v1790_v52 }
 0x147   :  { %3644 = vmatprep.subr.msk.mxu0 %vm145_vm9, %v1795_v28 }
 0x148   :  { %3645 = vmatpush1.msk.msra.mxu0 %vm145_vm9, %v1794_v41 }
 0x149   :  { %3646 = vmatmul.mubr.msk.f32.vlgmr.msra.gmra.mxu0 %vm141_vm10, %v3643_v25  ;;  %v1792_v8 = vpop.permute.xlu0 %1791 }
 0x14a   :  { %v1797_v2 = vsel %vm1793_vm2, %v1790_v52, %v1792_v8  ;;  %2094 = vmatprep.mubr.f32.mxu0 %v4542_v36 }
 0x14b   :  { %3647 = vmatprep.subr.msk.mxu1 %vm145_vm9, %v1797_v2 }
 0x14c   :  { %3648 = vmatpush1.msk.msra.mxu1 %vm145_vm9, %v1796_v6 }
 0x14d   :  { %3649 = vmatmul.mubr.msk.f32.vlgmr.msra.gmra.mxu1 %vm141_vm10, %v3643_v25 }
 0x14e   :  { %2165 = vmatprep.mubr.f32.mxu1 %v4542_v36 }
 0x1dd   :  { %v220_v53 = vpop.f32.mrf.mxu0 }
 0x1df   :  { %v222_v37 = vpop.f32.mrf.mxu0 }
 0x1e1   :  { %v377_v14 = vpop.f32.mrf.mxu0  ;;  %v291_v58 = vpop.f32.mrf.mxu1 }
 0x1e2   :  { %v378_v10 = vadd.f32 %v377_v14, %v220_v53 }
 0x1e3   :  { %v379_v55 = vpop.f32.mrf.mxu0  ;;  %v293_v59 = vpop.f32.mrf.mxu1 }
 0x1e4   :  { %v380_v28 = vadd.f32 %v379_v55, %v222_v37 }
 0x1e5   :  { %v448_v32 = vpop.f32.mrf.mxu1 }
 0x1e6   :  { %v594_v24 = vpop.f32.mrf.mxu0  ;;  %v449_v0 = vadd.f32 %v448_v32, %v291_v58 }
 0x1e7   :  { %v450_v16 = vpop.f32.mrf.mxu1  ;;  %v670_v25 = vadd.f32 %v594_v24, %v378_v10 }
 0x1e8   :  { %v596_v42 = vpop.f32.mrf.mxu0  ;;  %v451_v41 = vadd.f32 %v450_v16, %v293_v59 }
 0x1e9   :  { %v665_v47 = vpop.f32.mrf.mxu1  ;;  %v671_v20 = vadd.f32 %v596_v42, %v380_v28 }
 0x1ea   :  { %v815_v45 = vpop.f32.mrf.mxu0  ;;  %v672_v6 = vadd.f32 %v665_v47, %v449_v0 }
 0x1eb   :  { %v667_v48 = vpop.f32.mrf.mxu1  ;;  %v891_v19 = vadd.f32 %v815_v45, %v670_v25 }
 0x1ec   :  { %v817_v40 = vpop.f32.mrf.mxu0  ;;  %v673_v36 = vadd.f32 %v667_v48, %v451_v41 }
 0x1ed   :  { %v886_v52 = vpop.f32.mrf.mxu1  ;;  %v892_v21 = vadd.f32 %v817_v40, %v671_v20  ;;  %v1959_v20 = vpop.permute.xlu0 %1958 }
 0x1ee   :  { %v991_v54 = vpop.f32.mrf.mxu0  ;;  %v893_v33 = vadd.f32 %v886_v52, %v672_v6 }
 0x1ef   :  { %v888_v29 = vpop.f32.mrf.mxu1  ;;  %v1067_v62 = vadd.f32 %v991_v54, %v891_v19 }
 0x1f0   :  { %v993_v11 = vpop.f32.mrf.mxu0  ;;  %v894_v27 = vadd.f32 %v888_v29, %v673_v36 }
 0x1f1   :  { %v1062_v51 = vpop.f32.mrf.mxu1  ;;  %v1068_v58 = vadd.f32 %v993_v11, %v892_v21 }
 0x1f2   :  { %v1212_v8 = vpop.f32.mrf.mxu0  ;;  %v1069_v14 = vadd.f32 %v1062_v51, %v893_v33 }
 0x1f3   :  { %v1064_v63 = vpop.f32.mrf.mxu1  ;;  %v1288_v37 = vadd.f32 %v1212_v8, %v1067_v62 }
 0x1f4   :  { %v1214_v18 = vpop.f32.mrf.mxu0  ;;  %v1070_v55 = vadd.f32 %v1064_v63, %v894_v27 }
 0x1f5   :  { %v1283_v2 = vpop.f32.mrf.mxu1  ;;  %v1289_v24 = vadd.f32 %v1214_v18, %v1068_v58 }
 0x1f6   :  { %v1290_v16 = vadd.f32 %v1283_v2, %v1069_v14 }
 0x1f7   :  { %v1285_v17 = vpop.f32.mrf.mxu1 }
 0x1f8   :  { %v1291_v48 = vadd.f32 %v1285_v17, %v1070_v55 }
 0x1f9   :  { %v1433_v22 = vpop.f32.mrf.mxu0  ;;  %v1504_v53 = vpop.f32.mrf.mxu1 }
 0x1fa   :  { %v1509_v42 = vadd.f32 %v1433_v22, %v1288_v37  ;;  %v1511_v19 = vadd.f32 %v1504_v53, %v1290_v16 }
 0x1fb   :  { %v1435_v5 = vpop.f32.mrf.mxu0  ;;  %v1506_v32 = vpop.f32.mrf.mxu1 }
 0x1fc   :  { %v1510_v10 = vadd.f32 %v1435_v5, %v1289_v24  ;;  %v1512_v21 = vadd.f32 %v1506_v32, %v1291_v48  ;;  %v4543_v48 = vld [vmem:[#allocation8_spill] sm:$0xff] }
 0x201   :  { %v1725_v45 = vpop.f32.mrf.mxu1 }
 0x202   :  { %v1732_v62 = vadd.f32 %v1725_v45, %v1511_v19 }
 0x203   :  { %v1727_v33 = vpop.f32.mrf.mxu1 }
 0x204   :  { %v1654_v59 = vpop.f32.mrf.mxu0  ;;  %v1733_v18 = vadd.f32 %v1727_v33, %v1512_v21  ;;  %v4549_v33 = vld [vmem:[#allocation14_spill] sm:$0xff]  ;;  %v4550_v21 = vld [vmem:[#allocation15_spill] sm:$0xff] }
 0x205   :  { %v1730_v52 = vadd.f32 %v1654_v59, %v1509_v42 }
 0x206   :  { %v1656_v47 = vpop.f32.mrf.mxu0 }
 0x207   :  { %v1731_v36 = vadd.f32 %v1656_v47, %v1510_v10  ;;  %v4544_v10 = vld [vmem:[#allocation6_spill] sm:$0xff] }
 0x209   :  { %v1875_v0 = vpop.f32.mrf.mxu0 }
 0x20a   :  { %v1951_v40 = vadd.f32 %v1875_v0, %v1730_v52  ;;  %v4545_v52 = vld [vmem:[#allocation7_spill] sm:$0xff]  ;;  %v4546_v0 = vld [vmem:[#allocation10_spill] sm:$0xff] }
 0x20b   :  { %v1877_v29 = vpop.f32.mrf.mxu0 }
 0x20c   :  { %v1952_v27 = vadd.f32 %v1877_v29, %v1731_v36  ;;  %v1961_v54 = vadd.f32 %v1959_v20, %v1951_v40  ;;  %v4548_v36 = vld [vmem:[#allocation13_spill] sm:$0xff] }
 0x20d   :  { %v1946_v51 = vpop.f32.mrf.mxu1 }
 0x20e   :  { %v1953_v11 = vadd.f32 %v1946_v51, %v1732_v62  ;;  %v1965_v22 = vmax.f32 %v1961_v54, 0.0  ;;  %v1962_v63 = vadd.f32 %v1959_v20, %v1952_v27  ;;  %v4551_v27 = vld [vmem:[#allocation9_spill] sm:$0xff]  ;;  %v4552_v51 = vld [vmem:[#allocation12_spill] sm:$0xff] }
 0x20f   :  { %v1948_v28 = vpop.f32.mrf.mxu1 }
 0x210   :  { %v1963_v17 = vadd.f32 %v1959_v20, %v1953_v11  ;;  %v1954_v5 = vadd.f32 %v1948_v28, %v1733_v18  ;;  %1973 = vrot.lane.b32.xlu1 %v1965_v22, %s3697_s25  ;;  %v1966_v8 = vmax.f32 %v1962_v63, 0.0  ;;  %v3562_v11 = vld [vmem:[%s4508_s5] sm:$0xff] }
 0x212   :  { %v1967_v25 = vmax.f32 %v1963_v17, 0.0  ;;  %v1964_v41 = vadd.f32 %v1959_v20, %v1954_v5  ;;  %v4547_v20 = vld [vmem:[#allocation11_spill] sm:$0xff] }
 0x214   :  { %1977 = vrot.lane.b32.xlu0 %v1967_v25, %s3697_s25  ;;  %1975 = vrot.lane.b32.xlu1 %v1966_v8, %s3697_s25  ;;  %v1968_v2 = vmax.f32 %v1964_v41, 0.0 }
 0x218   :  { %1979 = vrot.lane.b32.xlu1 %v1968_v2, %s3697_s25 }
 0x282   :  { %v1974_v6 = vpop.permute.xlu1 %1973 }
 0x283   :  { %v4232_v53 = vsel %vm45_vm0, 0.0, %v1974_v6 }
 0x284   :  { %2679 = vrot.lane.b32.xlu1 %v4232_v53, %s3705_s24  ;;  %v1996_v14 = vmul.f32 %v4232_v53, %v3825_v57  ;;  %v2317_v37 = vmul.f32 %v4232_v53, %v3845_v1  ;;  %v2496_v55 = vmul.f32 %v4232_v53, %v3855_v7  ;;  %v3025_v16 = vmul.f32 %v4232_v53, %v3879_v23 }
 0x285   :  { %v2846_v42 = vmul.f32 %v4232_v53, %v3865_v13  ;;  %v3204_v45 = vmul.f32 %v4232_v53, %v3942_v46  ;;  %v3383_v54 = vmul.f32 %v4232_v53, %v4551_v27  ;;  %v3664_v27 = vld [vmem:[%s4509_s4 + $0x28] sm:$0xff] }
 0x286   :  { %2008 = vrot.lane.b32.xlu0 %v1996_v14, %s3706_s1  ;;  %v1976_v58 = vpop.permute.xlu1 %1975  ;;  %v1978_v59 = vpop.permute.xlu0 %1977 }
 0x287   :  { %v4246_v32 = vsel %vm45_vm0, %v1974_v6, %v1976_v58  ;;  %v4251_v57 = vsel %vm45_vm0, %v1976_v58, %v1978_v59 }
 0x288   :  { %2329 = vrot.lane.b32.xlu1 %v2317_v37, %s3707_s26  ;;  %v1998_v47 = vmul.f32 %v4251_v57, %v3885_v26  ;;  %v1997_v13 = vmul.f32 %v4246_v32, %v3895_v30  ;;  %v2318_v26 = vmul.f32 %v4246_v32, %v3899_v31  ;;  %v2319_v30 = vmul.f32 %v4251_v57, %v3921_v38 }
 0x289   :  { %v2498_v31 = vmul.f32 %v4251_v57, %v3924_v39  ;;  %v2497_v38 = vmul.f32 %v4246_v32, %v3938_v44  ;;  %v2848_v39 = vmul.f32 %v4251_v57, %v3934_v43  ;;  %v2847_v44 = vmul.f32 %v4246_v32, %v3969_v61 }
 0x28a   :  { %2508 = vrot.lane.b32.xlu0 %v2496_v55, %s3708_s27  ;;  %v1980_v24 = vpop.permute.xlu1 %1979  ;;  %v3026_v43 = vmul.f32 %v4246_v32, %v3955_v50  ;;  %v3027_v61 = vmul.f32 %v4251_v57, %v3997_v12  ;;  %v3206_v50 = vmul.f32 %v4251_v57, %v4543_v48  ;;  %v3205_v12 = vmul.f32 %v4246_v32, %v4546_v0 }
 0x28b   :  { %v4256_v1 = vsel %vm45_vm0, %v1978_v59, %v1980_v24  ;;  %v4261_v7 = vsel %vm45_vm0, %v1980_v24, 0.0  ;;  %v3384_v19 = vmul.f32 %v4246_v32, %v4547_v20  ;;  %v3385_v62 = vmul.f32 %v4251_v57, %v4550_v21 }
 0x28c   :  { %2681 = vrot.lane.b32.xlu1 %v4246_v32, %s3705_s24  ;;  %v2000_v23 = vmul.f32 %v4261_v7, %v3837_v60  ;;  %v1999_v46 = vmul.f32 %v4256_v1, %v3908_v34  ;;  %v2320_v60 = vmul.f32 %v4256_v1, %v3912_v35  ;;  %v2321_v34 = vmul.f32 %v4261_v7, %v3850_v3 }
 0x28d   :  { %v2500_v35 = vmul.f32 %v4261_v7, %v3860_v9  ;;  %v2499_v3 = vmul.f32 %v4256_v1, %v3950_v49  ;;  %v2850_v9 = vmul.f32 %v4261_v7, %v3870_v15  ;;  %v2849_v49 = vmul.f32 %v4256_v1, %v3982_v4 }
 0x28e   :  { %2683 = vrot.lane.b32.xlu0 %v4251_v57, %s3705_s24  ;;  %v3028_v15 = vmul.f32 %v4256_v1, %v3965_v56  ;;  %v3029_v4 = vmul.f32 %v4261_v7, %v4544_v10  ;;  %v3208_v56 = vmul.f32 %v4261_v7, %v4545_v52  ;;  %v3207_v40 = vmul.f32 %v4256_v1, %v4548_v36 }
 0x28f   :  { %v3386_v29 = vmul.f32 %v4256_v1, %v4549_v33  ;;  %v3387_v18 = vmul.f32 %v4261_v7, %v4552_v51  ;;  %vm2026_vm0 = vcmask 64512  }
 0x290   :  { %2685 = vrot.lane.b32.xlu1 %v4256_v1, %s3705_s24 }
 0x292   :  { %2687 = vrot.lane.b32.xlu0 %v4261_v7, %s3705_s24  ;;  %v3650_v7 = vld [vmem:[%s4509_s4 + $0x8] sm:$0xff] }
 0x294   :  { %3037 = vrot.lane.b32.xlu1 %v3025_v16, %s3711_s29 }
 0x296   :  { %2858 = vrot.lane.b32.xlu0 %v2846_v42, %s3709_s28  ;;  %v4553_v42 = vld [vmem:[#allocation2_spill] sm:$0xff] }
 0x298   :  { %2012 = vrot.lane.b32.xlu1 %v1998_v47, %s3706_s1  ;;  %v1992_v47 = vmul.f32 %v4246_v32, %v4553_v42 }
 0x29a   :  { %3216 = vrot.lane.b32.xlu0 %v3204_v45, %s3712_s0  ;;  %v4554_v45 = vld [vmem:[#allocation3_spill] sm:$0xff] }
 0x29c   :  { %2016 = vrot.lane.b32.xlu1 %v2000_v23, %s3706_s1  ;;  %v1991_v23 = vmul.f32 %v4232_v53, %v4554_v45  ;;  %v1995_v53 = vld [vmem:[%s4509_s4] sm:$0xff] }
 0x29e   :  { %2010 = vrot.lane.b32.xlu0 %v1997_v13, %s3706_s1 }
 0x2a0   :  { %2331 = vrot.lane.b32.xlu1 %v2318_v26, %s3707_s26 }
 0x2a2   :  { %2014 = vrot.lane.b32.xlu0 %v1999_v46, %s3706_s1 }
 0x2a4   :  { %2335 = vrot.lane.b32.xlu1 %v2320_v60, %s3707_s26  ;;  %v4555_v60 = vmov 0.0  }
 0x2a6   :  { %2333 = vrot.lane.b32.xlu0 %v2319_v30, %s3707_s26 }
 0x2a8   :  { %2512 = vrot.lane.b32.xlu1 %v2498_v31, %s3708_s27  ;;  %v4556_v31 = vld [vmem:[#allocation4_spill] sm:$0xff] }
 0x2a9   :  { %v1994_v32 = vmul.f32 %v4256_v1, %v4556_v31 }
 0x2aa   :  { %2337 = vrot.lane.b32.xlu0 %v2321_v34, %s3707_s26  ;;  %v4557_v34 = vld [vmem:[#allocation5_spill] sm:$0xff] }
 0x2ac   :  { %2516 = vrot.lane.b32.xlu1 %v2500_v35, %s3708_s27  ;;  %v1993_v35 = vmul.f32 %v4251_v57, %v4557_v34 }
 0x2ae   :  { %2510 = vrot.lane.b32.xlu0 %v2497_v38, %s3708_s27 }
 0x2b0   :  { %2862 = vrot.lane.b32.xlu1 %v2848_v39, %s3709_s28 }
 0x2b2   :  { %2514 = vrot.lane.b32.xlu0 %v2499_v3, %s3708_s27 }
 0x2b4   :  { %2866 = vrot.lane.b32.xlu1 %v2850_v9, %s3709_s28  ;;  %v3655_v9 = vld [vmem:[%s4509_s4 + $0x10] sm:$0xff] }
 0x2b6   :  { %2860 = vrot.lane.b32.xlu0 %v2847_v44, %s3709_s28 }
 0x2b8   :  { %3039 = vrot.lane.b32.xlu1 %v3026_v43, %s3711_s29 }
 0x2ba   :  { %2864 = vrot.lane.b32.xlu0 %v2849_v49, %s3709_s28 }
 0x2bc   :  { %3043 = vrot.lane.b32.xlu1 %v3028_v15, %s3711_s29 }
 0x2be   :  { %3041 = vrot.lane.b32.xlu0 %v3027_v61, %s3711_s29 }
 0x2c0   :  { %3220 = vrot.lane.b32.xlu1 %v3206_v50, %s3712_s0  ;;  %v3658_v50 = vld [vmem:[%s4509_s4 + $0x18] sm:$0xff] }
 0x2c2   :  { %3045 = vrot.lane.b32.xlu0 %v3029_v4, %s3711_s29 }
 0x2c4   :  { %3224 = vrot.lane.b32.xlu1 %v3208_v56, %s3712_s0 }
 0x2c6   :  { %3218 = vrot.lane.b32.xlu0 %v3205_v12, %s3712_s0 }
 0x2c8   :  { %3397 = vrot.lane.b32.xlu1 %v3384_v19, %s3713_s30  ;;  %v3661_v19 = vld [vmem:[%s4509_s4 + $0x20] sm:$0xff] }
 0x2ca   :  { %3222 = vrot.lane.b32.xlu0 %v3207_v40, %s3712_s0 }
 0x2cc   :  { %3401 = vrot.lane.b32.xlu1 %v3386_v29, %s3713_s30 }
 0x2ce   :  { %3399 = vrot.lane.b32.xlu0 %v3385_v62, %s3713_s30 }
 0x2d0   :  { %3395 = vrot.lane.b32.xlu1 %v3383_v54, %s3713_s30 }
 0x2d2   :  { %3403 = vrot.lane.b32.xlu0 %v3387_v18, %s3713_s30 }
 0x2d6   :  { %3565 = vperm.xlu0 %3694, %v3562_v11  }
 0x2f6   :  { %v4364_v22 = vpop.permute.xlu1 %2679 }
 0x2f8   :  { %v2009_v63 = vpop.permute.xlu0 %2008 }
 0x2fa   :  { %v2330_v28 = vpop.permute.xlu1 %2329 }
 0x2fc   :  { %v2509_v17 = vpop.permute.xlu0 %2508 }
 0x2fe   :  { %v4366_v5 = vpop.permute.xlu1 %2681 }
 0x2ff   :  { %v2689_v52 = vsel %vm909_vm13, %v4364_v22, %v4366_v5 }
 0x300   :  { %v4368_v25 = vpop.permute.xlu0 %2683 }
 0x301   :  { %v2690_v4 = vsel %vm909_vm13, %v4366_v5, %v4368_v25 }
 0x302   :  { %v4370_v41 = vpop.permute.xlu1 %2685 }
 0x303   :  { %v2691_v40 = vsel %vm909_vm13, %v4368_v25, %v4370_v41 }
 0x304   :  { %v4372_v8 = vpop.permute.xlu0 %2687 }
 0x305   :  { %v2692_v36 = vsel %vm909_vm13, %v4370_v41, %v4372_v8 }
 0x306   :  { %v4374_v2 = vpop.permute.xlu1 %3037 }
 0x308   :  { %v4376_v6 = vpop.permute.xlu0 %2858 }
 0x30a   :  { %v2013_v14 = vpop.permute.xlu1 %2012 }
 0x30c   :  { %v4378_v58 = vpop.permute.xlu0 %3216 }
 0x30e   :  { %v2017_v37 = vpop.permute.xlu1 %2016 }
 0x310   :  { %v2011_v55 = vpop.permute.xlu0 %2010 }
 0x311   :  { %v2018_v59 = vsel %vm136_vm8, %v2009_v63, %v2011_v55  ;;  %v2019_v24 = vsel %vm136_vm8, %v2011_v55, %v2013_v14  ;;  %v3670_v55 = vld [vmem:[%s4509_s4 + $0x38] sm:$0xff] }
 0x312   :  { %2060 = vmatprep.subr.mxu0 %v2019_v24  ;;  %v2332_v16 = vpop.permute.xlu1 %2331 }
 0x313   :  { %2061 = vmatpush1.msra.mxu0 %v2018_v59  ;;  %v2339_v3 = vsel %vm512_vm11, %v2330_v28, %v2332_v16  ;;  %v3667_v28 = vld [vmem:[%s4509_s4 + $0x30] sm:$0xff] }
 0x314   :  { %v2015_v13 = vpop.permute.xlu0 %2014  ;;  %2205 = vmatprep.subr.mxu0 %v1992_v47  ;;  %3651 = vmatmul.mubr.msk.f32.vlgmr.msra.gmra.mxu0 %vm2026_vm0, %v3650_v7 }
 0x315   :  { %v2020_v26 = vsel %vm136_vm8, %v2013_v14, %v2015_v13  ;;  %2206 = vmatpush1.msra.mxu0 %v1991_v23  ;;  %v2021_v46 = vsel %vm136_vm8, %v2015_v13, %v2017_v37  ;;  %2239 = vmatprep.mubr.f32.mxu0 %v4555_v60  ;;  %v3673_v23 = vld [vmem:[%s4509_s4 + $0x40] sm:$0xff] }
 0x316   :  { %2131 = vmatprep.subr.mxu1 %v2021_v46  ;;  %v2336_v30 = vpop.permute.xlu1 %2335 }
 0x317   :  { %2132 = vmatpush1.msra.mxu1 %v2020_v26 }
 0x318   :  { %v2334_v38 = vpop.permute.xlu0 %2333  ;;  %2276 = vmatprep.subr.mxu1 %v1994_v32  ;;  %3652 = vmatmul.mubr.msk.f32.vlgmr.msra.gmra.mxu1 %vm2026_vm0, %v3650_v7 }
 0x319   :  { %2277 = vmatpush1.msra.mxu1 %v1993_v35  ;;  %v2340_v39 = vsel %vm512_vm11, %v2332_v16, %v2334_v38  ;;  %3653 = vmatmul.mubr.msk.f32.vlgmr.msra.gmra.mxu0 %vm2026_vm0, %v1995_v53  ;;  %v2341_v43 = vsel %vm512_vm11, %v2334_v38, %v2336_v30 }
 0x31a   :  { %2380 = vmatprep.subr.mxu0 %v2340_v39  ;;  %v2513_v1 = vpop.permute.xlu1 %2512  ;;  %2310 = vmatprep.mubr.f32.mxu1 %v4555_v60 }
 0x31b   :  { %2381 = vmatpush1.msra.mxu0 %v2339_v3  ;;  %2414 = vmatprep.mubr.f32.mxu0 %v4555_v60 }
 0x31c   :  { %v2338_v57 = vpop.permute.xlu0 %2337  ;;  %3654 = vmatmul.mubr.msk.f32.vlgmr.msra.gmra.mxu1 %vm2026_vm0, %v1995_v53 }
 0x31d   :  { %v2342_v44 = vsel %vm512_vm11, %v2336_v30, %v2338_v57  ;;  %3656 = vmatmul.mubr.msk.f32.vlgmr.msra.gmra.mxu0 %vm2026_vm0, %v3655_v9  ;;  %2485 = vmatprep.mubr.f32.mxu1 %v4555_v60 }
 0x31e   :  { %2451 = vmatprep.subr.mxu1 %v2342_v44  ;;  %v2517_v49 = vpop.permute.xlu1 %2516  ;;  %2593 = vmatprep.mubr.f32.mxu0 %v4555_v60 }
 0x31f   :  { %2452 = vmatpush1.msra.mxu1 %v2341_v43 }
 0x320   :  { %v2511_v15 = vpop.permute.xlu0 %2510  ;;  %3657 = vmatmul.mubr.msk.f32.vlgmr.msra.gmra.mxu1 %vm2026_vm0, %v3655_v9 }
 0x321   :  { %v2518_v61 = vsel %vm733_vm12, %v2509_v17, %v2511_v15  ;;  %v2519_v48 = vsel %vm733_vm12, %v2511_v15, %v2513_v1  ;;  %2664 = vmatprep.mubr.f32.mxu1 %v4555_v60 }
 0x322   :  { %2559 = vmatprep.subr.mxu0 %v2519_v48  ;;  %v2863_v10 = vpop.permute.xlu1 %2862 }
 0x323   :  { %2560 = vmatpush1.msra.mxu0 %v2518_v61 }
 0x324   :  { %v2515_v56 = vpop.permute.xlu0 %2514  ;;  %2730 = vmatprep.subr.mxu0 %v2690_v4  ;;  %3659 = vmatmul.mubr.msk.f32.vlgmr.msra.gmra.mxu0 %vm2026_vm0, %v3658_v50 }
 0x325   :  { %v2520_v0 = vsel %vm733_vm12, %v2513_v1, %v2515_v56  ;;  %2731 = vmatpush1.msra.mxu0 %v2689_v52  ;;  %v2521_v12 = vsel %vm733_vm12, %v2515_v56, %v2517_v49  ;;  %2764 = vmatprep.mubr.f32.mxu0 %v4555_v60 }
 0x326   :  { %2630 = vmatprep.subr.mxu1 %v2521_v12  ;;  %v2867_v20 = vpop.permute.xlu1 %2866 }
 0x327   :  { %2631 = vmatpush1.msra.mxu1 %v2520_v0 }
 0x328   :  { %v2861_v33 = vpop.permute.xlu0 %2860  ;;  %2801 = vmatprep.subr.mxu1 %v2692_v36  ;;  %3660 = vmatmul.mubr.msk.f32.vlgmr.msra.gmra.mxu1 %vm2026_vm0, %v3658_v50 }
 0x329   :  { %v2868_v29 = vsel %vm1130_vm14, %v4376_v6, %v2861_v33  ;;  %2802 = vmatpush1.msra.mxu1 %v2691_v40  ;;  %v2869_v21 = vsel %vm1130_vm14, %v2861_v33, %v2863_v10  ;;  %3662 = vmatmul.mubr.msk.f32.vlgmr.msra.gmra.mxu0 %vm2026_vm0, %v3661_v19 }
 0x32a   :  { %2909 = vmatprep.subr.mxu0 %v2869_v21  ;;  %v3040_v62 = vpop.permute.xlu1 %3039  ;;  %2835 = vmatprep.mubr.f32.mxu1 %v4555_v60 }
 0x32b   :  { %2910 = vmatpush1.msra.mxu0 %v2868_v29  ;;  %2943 = vmatprep.mubr.f32.mxu0 %v4555_v60  ;;  %v3047_v17 = vsel %vm1351_vm15, %v4374_v2, %v3040_v62 }
 0x32c   :  { %v2865_v54 = vpop.permute.xlu0 %2864  ;;  %3663 = vmatmul.mubr.msk.f32.vlgmr.msra.gmra.mxu1 %vm2026_vm0, %v3661_v19 }
 0x32d   :  { %v2870_v51 = vsel %vm1130_vm14, %v2863_v10, %v2865_v54  ;;  %v2871_v18 = vsel %vm1130_vm14, %v2865_v54, %v2867_v20  ;;  %3665 = vmatmul.mubr.msk.f32.vlgmr.msra.gmra.mxu0 %vm2026_vm0, %v3664_v27  ;;  %3014 = vmatprep.mubr.f32.mxu1 %v4555_v60 }
 0x32e   :  { %2980 = vmatprep.subr.mxu1 %v2871_v18  ;;  %v3044_v11 = vpop.permute.xlu1 %3043  ;;  %3122 = vmatprep.mubr.f32.mxu0 %v4555_v60 }
 0x32f   :  { %2981 = vmatpush1.msra.mxu1 %v2870_v51 }
 0x330   :  { %v3042_v22 = vpop.permute.xlu0 %3041  ;;  %3666 = vmatmul.mubr.msk.f32.vlgmr.msra.gmra.mxu1 %vm2026_vm0, %v3664_v27 }
 0x331   :  { %v3048_v63 = vsel %vm1351_vm15, %v3040_v62, %v3042_v22  ;;  %3193 = vmatprep.mubr.f32.mxu1 %v4555_v60  ;;  %v3049_v8 = vsel %vm1351_vm15, %v3042_v22, %v3044_v11 }
 0x332   :  { %3088 = vmatprep.subr.mxu0 %v3048_v63  ;;  %v3221_v5 = vpop.permute.xlu1 %3220 }
 0x333   :  { %3089 = vmatpush1.msra.mxu0 %v3047_v17 }
 0x334   :  { %v3046_v25 = vpop.permute.xlu0 %3045  ;;  %3668 = vmatmul.mubr.msk.f32.vlgmr.msra.gmra.mxu0 %vm2026_vm0, %v3667_v28 }
 0x335   :  { %v3050_v41 = vsel %vm1351_vm15, %v3044_v11, %v3046_v25  ;;  %3301 = vmatprep.mubr.f32.mxu0 %v4555_v60 }
 0x336   :  { %3159 = vmatprep.subr.mxu1 %v3050_v41  ;;  %v3225_v6 = vpop.permute.xlu1 %3224 }
 0x337   :  { %3160 = vmatpush1.msra.mxu1 %v3049_v8 }
 0x338   :  { %v3219_v14 = vpop.permute.xlu0 %3218  ;;  %3669 = vmatmul.mubr.msk.f32.vlgmr.msra.gmra.mxu1 %vm2026_vm0, %v3667_v28 }
 0x339   :  { %v3226_v2 = vsel %vm1572_vm1, %v4378_v58, %v3219_v14  ;;  %v3227_v37 = vsel %vm1572_vm1, %v3219_v14, %v3221_v5  ;;  %3372 = vmatprep.mubr.f32.mxu1 %v4555_v60 }
 0x33a   :  { %3267 = vmatprep.subr.mxu0 %v3227_v37  ;;  %v3398_v59 = vpop.permute.xlu1 %3397 }
 0x33b   :  { %3268 = vmatpush1.msra.mxu0 %v3226_v2 }
 0x33c   :  { %v3223_v24 = vpop.permute.xlu0 %3222  ;;  %3671 = vmatmul.mubr.msk.f32.vlgmr.msra.gmra.mxu0 %vm2026_vm0, %v3670_v55 }
 0x33d   :  { %v3228_v7 = vsel %vm1572_vm1, %v3221_v5, %v3223_v24  ;;  %v3229_v16 = vsel %vm1572_vm1, %v3223_v24, %v3225_v6  ;;  %3480 = vmatprep.mubr.f32.mxu0 %v4555_v60 }
 0x33e   :  { %3338 = vmatprep.subr.mxu1 %v3229_v16  ;;  %v3402_v58 = vpop.permute.xlu1 %3401 }
 0x33f   :  { %3339 = vmatpush1.msra.mxu1 %v3228_v7 }
 0x340   :  { %v3400_v42 = vpop.permute.xlu0 %3399  ;;  %3672 = vmatmul.mubr.msk.f32.vlgmr.msra.gmra.mxu1 %vm2026_vm0, %v3670_v55 }
 0x341   :  { %v3406_v47 = vsel %vm1793_vm2, %v3398_v59, %v3400_v42  ;;  %3551 = vmatprep.mubr.f32.mxu1 %v4555_v60  ;;  %v3407_v30 = vsel %vm1793_vm2, %v3400_v42, %v3402_v58 }
 0x342   :  { %3446 = vmatprep.subr.mxu0 %v3406_v47  ;;  %v3396_v45 = vpop.permute.xlu1 %3395 }
 0x343   :  { %v3405_v13 = vsel %vm1793_vm2, %v3396_v45, %v3398_v59 }
 0x344   :  { %v3404_v26 = vpop.permute.xlu0 %3403  ;;  %3447 = vmatpush1.msra.mxu0 %v3405_v13 }
 0x345   :  { %3674 = vmatmul.mubr.msk.f32.vlgmr.msra.gmra.mxu0 %vm2026_vm0, %v3673_v23  ;;  %v3408_v46 = vsel %vm1793_vm2, %v3402_v58, %v3404_v26 }
 0x346   :  { %3517 = vmatprep.subr.mxu1 %v3408_v46 }
 0x347   :  { %3518 = vmatpush1.msra.mxu1 %v3407_v30 }
 0x348   :  { %3675 = vmatmul.mubr.msk.f32.vlgmr.msra.gmra.mxu1 %vm2026_vm0, %v3673_v23 }
 0x351   :  { %v3566_v23 = vpop.permute.xlu0 %3565 }
 0x3d4   :  { %v2096_v60 = vpop.f32.mrf.mxu0 }
 0x3d6   :  { %v2098_v31 = vpop.f32.mrf.mxu0 }
 0x3d8   :  { %v2167_v32 = vpop.f32.mrf.mxu1 }
 0x3d9   :  { %v2241_v53 = vpop.f32.mrf.mxu0 }
 0x3da   :  { %v2169_v34 = vpop.f32.mrf.mxu1  ;;  %v2242_v10 = vadd.f32 %v2241_v53, %v2096_v60 }
 0x3db   :  { %v2243_v35 = vpop.f32.mrf.mxu0 }
 0x3dc   :  { %v2312_v38 = vpop.f32.mrf.mxu1  ;;  %v2244_v4 = vadd.f32 %v2243_v35, %v2098_v31 }
 0x3dd   :  { %v2416_v39 = vpop.f32.mrf.mxu0  ;;  %v2313_v56 = vadd.f32 %v2312_v38, %v2167_v32 }
 0x3de   :  { %v2314_v3 = vpop.f32.mrf.mxu1  ;;  %v2492_v12 = vadd.f32 %v2416_v39, %v2242_v10 }
 0x3df   :  { %v2418_v9 = vpop.f32.mrf.mxu0  ;;  %v2315_v36 = vadd.f32 %v2314_v3, %v2169_v34 }
 0x3e0   :  { %v2487_v1 = vpop.f32.mrf.mxu1  ;;  %v2493_v20 = vadd.f32 %v2418_v9, %v2244_v4 }
 0x3e1   :  { %v2494_v40 = vadd.f32 %v2487_v1, %v2313_v56 }
 0x3e2   :  { %v2489_v57 = vpop.f32.mrf.mxu1 }
 0x3e3   :  { %v2495_v54 = vadd.f32 %v2489_v57, %v2315_v36 }
 0x3e4   :  { %v2595_v44 = vpop.f32.mrf.mxu0 }
 0x3e5   :  { %v2671_v29 = vadd.f32 %v2595_v44, %v2492_v12 }
 0x3e6   :  { %v2597_v43 = vpop.f32.mrf.mxu0 }
 0x3e7   :  { %v2672_v62 = vadd.f32 %v2597_v43, %v2493_v20 }
 0x3e8   :  { %v2666_v49 = vpop.f32.mrf.mxu1 }
 0x3e9   :  { %v2766_v61 = vpop.f32.mrf.mxu0  ;;  %v2673_v51 = vadd.f32 %v2666_v49, %v2494_v40 }
 0x3ea   :  { %v2668_v15 = vpop.f32.mrf.mxu1  ;;  %v2842_v18 = vadd.f32 %v2766_v61, %v2671_v29 }
 0x3eb   :  { %v2768_v50 = vpop.f32.mrf.mxu0  ;;  %v2674_v28 = vadd.f32 %v2668_v15, %v2495_v54 }
 0x3ec   :  { %v2837_v48 = vpop.f32.mrf.mxu1  ;;  %v2843_v63 = vadd.f32 %v2768_v50, %v2672_v62 }
 0x3ed   :  { %v2945_v0 = vpop.f32.mrf.mxu0  ;;  %v2844_v17 = vadd.f32 %v2837_v48, %v2673_v51 }
 0x3ee   :  { %v2839_v52 = vpop.f32.mrf.mxu1  ;;  %v3021_v25 = vadd.f32 %v2945_v0, %v2842_v18 }
 0x3ef   :  { %v2947_v33 = vpop.f32.mrf.mxu0  ;;  %v2845_v2 = vadd.f32 %v2839_v52, %v2674_v28 }
 0x3f0   :  { %v3016_v19 = vpop.f32.mrf.mxu1  ;;  %v3022_v8 = vadd.f32 %v2947_v33, %v2843_v63 }
 0x3f1   :  { %v3023_v37 = vadd.f32 %v3016_v19, %v2844_v17 }
 0x3f2   :  { %v3018_v27 = vpop.f32.mrf.mxu1 }
 0x3f3   :  { %v3024_v7 = vadd.f32 %v3018_v27, %v2845_v2 }
 0x3f4   :  { %v3124_v21 = vpop.f32.mrf.mxu0 }
 0x3f5   :  { %v3200_v6 = vadd.f32 %v3124_v21, %v3021_v25 }
 0x3f6   :  { %v3126_v22 = vpop.f32.mrf.mxu0 }
 0x3f7   :  { %v3201_v59 = vadd.f32 %v3126_v22, %v3022_v8 }
 0x3f8   :  { %v3195_v11 = vpop.f32.mrf.mxu1 }
 0x3f9   :  { %v3202_v16 = vadd.f32 %v3195_v11, %v3023_v37 }
 0x3fa   :  { %v3197_v41 = vpop.f32.mrf.mxu1 }
 0x3fb   :  { %v3203_v13 = vadd.f32 %v3197_v41, %v3024_v7 }
 0x3fc   :  { %v3303_v5 = vpop.f32.mrf.mxu0 }
 0x3fd   :  { %v3379_v24 = vadd.f32 %v3303_v5, %v3200_v6 }
 0x3fe   :  { %v3305_v55 = vpop.f32.mrf.mxu0 }
 0x3ff   :  { %v3380_v42 = vadd.f32 %v3305_v55, %v3201_v59 }
 0x400   :  { %v3374_v14 = vpop.f32.mrf.mxu1 }
 0x401   :  { %v3381_v26 = vadd.f32 %v3374_v14, %v3202_v16 }
 0x402   :  { %v3376_v47 = vpop.f32.mrf.mxu1 }
 0x403   :  { %v3382_v32 = vadd.f32 %v3376_v47, %v3203_v13 }
 0x405   :  { %v3482_v58 = vpop.f32.mrf.mxu0 }
 0x406   :  { %v3558_v45 = vadd.f32 %v3482_v58, %v3379_v24 }
 0x407   :  { %v3484_v46 = vpop.f32.mrf.mxu0 }
 0x408   :  { %v3568_v30 = vadd.f32 %v3566_v23, %v3558_v45  ;;  %v3559_v60 = vadd.f32 %v3484_v46, %v3380_v42  ;;  %v3553_v31 = vpop.f32.mrf.mxu1 }
 0x409   :  { %v3560_v53 = vadd.f32 %v3553_v31, %v3381_v26 }
 0x40a   :  { %v3572_v34 = vmax.f32 %v3568_v30, 0.0  ;;  %v3569_v35 = vadd.f32 %v3566_v23, %v3559_v60  ;;  %v3555_v38 = vpop.f32.mrf.mxu1 }
 0x40b   :  { %v3570_v39 = vadd.f32 %v3566_v23, %v3560_v53  ;;  %v3561_v3 = vadd.f32 %v3555_v38, %v3382_v32 }
 0x40c   :  { %3576 = vst [vmem:[%s4510_s6] sm:$0xff] %v3572_v34  ;;  %v3573_v1 = vmax.f32 %v3569_v35, 0.0 }
 0x40d   :  { %v3574_v9 = vmax.f32 %v3570_v39, 0.0  ;;  %v3571_v57 = vadd.f32 %v3566_v23, %v3561_v3 }
 0x40e   :  { %3577 = vst [vmem:[%s4510_s6 + $0x8] sm:$0xff] %v3573_v1 }
 0x40f   :  { %3578 = vst [vmem:[%s4510_s6 + $0x10] sm:$0xff] %v3574_v9  ;;  %v3575_v44 = vmax.f32 %v3571_v57, 0.0 }
 0x411   :  { %3579 = vst [vmem:[%s4510_s6 + $0x18] sm:$0xff] %v3575_v44 }

</bundles_post_ra>
